<compile_context>
chip_gen: v7x
topology: tpu7x:2x2x1
jax: 0.10.0
libtpu: 0.0.40
codegen_flags: <defaults>
</compile_context>

<pallas_src>
import functools
import math

import jax
import jax.numpy as jnp
from jax import lax
from jax.experimental import pallas as pl
from jax.experimental.pallas import tpu as pltpu


def _round_up(x, m):
    return ((x + m - 1) // m) * m


def _pick_rows_tile(h_out, w_out, target=512):
    """Output-row tile: rows*W_out lane-dense (multiple of 128) and dividing H_out."""
    lane_q = 128 // math.gcd(w_out, 128)
    cands = [r for r in range(1, h_out + 1)
             if h_out % r == 0 and (r % lane_q == 0 or r == h_out)]
    for r in cands:
        if r * w_out >= target:
            return r
    return cands[-1]


def _pick_bn_lane_tile(m_img, cap=2048):
    """Largest divisor of M_img that is a multiple of 128 and <= cap (else M_img)."""
    best = None
    for t in range(128, min(m_img, cap) + 1, 128):
        if m_img % t == 0:
            best = t
    return best if best is not None else m_img


def conv_stats_kernel(x_ref, w_ref, y_ref, stats_ref, patch_ref, *,
                      KH, KW, W_out, rows_tile, stride, C_in, co_store):
    """One (image, C_out-tile, M-tile) block per grid step.

    x_ref:     (H_pad, W_pad, C_in)        padded NHWC image (resident per image)
    w_ref:     (KH*KW*C_in, co_tile)       merged-tap weight block (lane-dense)
    y_ref:     (co_store, m_tile)          compact NCHW-layout conv output, f32
    stats_ref: (2, co_tile)                row 0 = channel sum, row 1 = sum of squares
    patch_ref: (m_tile, KH*KW*C_in)        VMEM scratch for the in-VMEM im2col
    """
    m = pl.program_id(2)
    m_tile = rows_tile * W_out

    start = m * rows_tile * stride
    if (rows_tile * stride) % 8 == 0:
        start = pl.multiple_of(start, 8)

    # ---- in-VMEM im2col: one C_in-wide column group per filter tap ----
    for kh in range(KH):
        for kw in range(KW):
            if stride == 1:
                win = x_ref[pl.ds(start + kh, rows_tile), kw:kw + W_out, :]
            else:
                # TODO(synk): strided sublane reads force relayouts; prefer a
                # wrapper-side pre-layout if stride > 1 becomes hot.
                win = x_ref[pl.ds(start + kh, rows_tile, stride),
                            pl.ds(kw, W_out, stride), :]
            tap = kh * KW + kw
            patch_ref[:, tap * C_in:(tap + 1) * C_in] = win.reshape(m_tile, C_in)

    # ---- single MXU contraction, K = KH*KW*C_in, f32 accumulation ----
    acc = jnp.dot(patch_ref[...], w_ref[...], preferred_element_type=jnp.float32)

    # ---- per-tile BN statistics (f32 epilogue), two direct row stores ----
    stats_ref[0:1, :] = jnp.sum(acc, axis=0, keepdims=True)
    stats_ref[1:2, :] = jnp.sum(acc * acc, axis=0, keepdims=True)

    # ---- compact transposed store: (co_store, m_tile) == NCHW layout.
    # One-hot dot keeps the transpose + channel-slice on the MXU (q @ k.T pattern).
    co_tile = acc.shape[1]
    row = lax.broadcasted_iota(jnp.int32, (co_store, co_tile), 0)
    col = lax.broadcasted_iota(jnp.int32, (co_store, co_tile), 1)
    e = (row == col).astype(jnp.float32)
    y_t = lax.dot_general(e, acc, (((1,), (1,)), ((), ())),
                          preferred_element_type=jnp.float32)
    y_ref[...] = y_t.astype(y_ref.dtype)


def bn_apply_kernel(y_ref, scale_ref, shift_ref, o_ref):
    # y_bn = (y - mean) * gamma * rsqrt(var + eps) + beta, folded into scale/shift.
    # (No ReLU: BasicConv.forward only applies conv and bn.)
    o_ref[...] = y_ref[...] * scale_ref[...] + shift_ref[...]


def basic_conv_forward(x, weight, gamma, beta, *, stride=1, padding=0,
                       eps=1e-5, compute_dtype=jnp.float32):
    """x: (N, C_in, H, W), weight: (C_out, C_in, KH, KW). Returns NCHW output.

    compute_dtype: dtype fed to the MXU for x/weight (use jnp.bfloat16 on v5e/v6e/v7x
    for ~2-4x matmul throughput and half the x/w DMA bytes; accumulation and the BN
    epilogue stay f32 either way).
    """
    N, C_in, H, W = x.shape
    C_out, _, KH, KW = weight.shape
    H_out = (H + 2 * padding - KH) // stride + 1
    W_out = (W + 2 * padding - KW) // stride + 1
    H_pad, W_pad = H + 2 * padding, W + 2 * padding
    M_img = H_out * W_out
    K = KH * KW * C_in

    # channel tiling (lane-dense weight / MXU tiles; compact stored channels)
    co_tile = min(_round_up(C_out, 128), 256)
    C_out_pad = _round_up(C_out, co_tile)
    num_co = C_out_pad // co_tile
    co_store = C_out if num_co == 1 else co_tile
    C_out_store = num_co * co_store

    # spatial tiling (output-row blocks, lane-dense m tiles)
    rows_tile = _pick_rows_tile(H_out, W_out)
    m_tile = rows_tile * W_out
    num_m = H_out // rows_tile

    # ---- cheap layout prep (no materialized im2col) ----
    x_nhwc = jnp.pad(x.transpose(0, 2, 3, 1),
                     ((0, 0), (padding, padding), (padding, padding), (0, 0)))
    x_nhwc = x_nhwc.astype(compute_dtype)

    # (C_out, C_in, KH, KW) -> (KH*KW*C_in, C_out_pad), tap-major rows
    w2 = weight.transpose(2, 3, 1, 0).reshape(K, C_out)
    w2 = jnp.pad(w2, ((0, 0), (0, C_out_pad - C_out))).astype(compute_dtype)

    # ---- fused conv + per-tile BN statistics (Pallas) ----
    conv_kernel = functools.partial(
        conv_stats_kernel, KH=KH, KW=KW, W_out=W_out, rows_tile=rows_tile,
        stride=stride, C_in=C_in, co_store=co_store)
    y, stats = pl.pallas_call(
        conv_kernel,
        out_shape=(jax.ShapeDtypeStruct((N, C_out_store, M_img), jnp.float32),
                   jax.ShapeDtypeStruct((N, num_m, 2, C_out_pad), jnp.float32)),
        grid_spec=pltpu.PrefetchScalarGridSpec(
            num_scalar_prefetch=0,
            grid=(N, num_co, num_m),
            in_specs=[
                # whole padded image, resident across the co/m axes (DMA'd once / n)
                pl.BlockSpec((None, H_pad, W_pad, C_in), lambda n, co, m: (n, 0, 0, 0)),
                pl.BlockSpec((K, co_tile), lambda n, co, m: (0, co)),
            ],
            out_specs=[
                pl.BlockSpec((None, co_store, m_tile), lambda n, co, m: (n, co, m)),
                pl.BlockSpec((None, None, 2, co_tile), lambda n, co, m: (n, m, 0, co)),
            ],
            scratch_shapes=[pltpu.VMEM((m_tile, K), compute_dtype)],
        ),
        compiler_params=pltpu.CompilerParams(
            dimension_semantics=("parallel", "parallel", "parallel")),
    )(x_nhwc, w2)

    # ---- combine stats -> per-channel scale/shift (tiny, plain JAX) ----
    # TODO(synk): E[x^2]-E[x]^2 is cancellation-prone for very large activations;
    # stats are f32 and activations here are O(1), which is within BN tolerance.
    cnt = jnp.asarray(N * M_img, jnp.float32)
    ch_sum = jnp.sum(stats[:, :, 0, :C_out], axis=(0, 1))
    ch_ssq = jnp.sum(stats[:, :, 1, :C_out], axis=(0, 1))
    mean = ch_sum / cnt
    var = ch_ssq / cnt - mean * mean               # biased variance (BN training mode)
    inv = lax.rsqrt(var + eps)
    scale = gamma.astype(jnp.float32) * inv
    shift = beta.astype(jnp.float32) - mean * scale
    if C_out_store != C_out:
        scale = jnp.pad(scale, (0, C_out_store - C_out))
        shift = jnp.pad(shift, (0, C_out_store - C_out))
    scale = scale.reshape(C_out_store, 1)
    shift = shift.reshape(C_out_store, 1)

    # ---- tiled, lane-dense BN apply, in place via input/output aliasing ----
    m_bn = _pick_bn_lane_tile(M_img)
    y_bn = pl.pallas_call(
        bn_apply_kernel,
        out_shape=jax.ShapeDtypeStruct((N, C_out_store, M_img), jnp.float32),
        grid_spec=pltpu.PrefetchScalarGridSpec(
            num_scalar_prefetch=0,
            grid=(N, M_img // m_bn),
            in_specs=[
                pl.BlockSpec((None, C_out_store, m_bn), lambda n, j: (n, 0, j)),
                pl.BlockSpec((C_out_store, 1), lambda n, j: (0, 0)),
                pl.BlockSpec((C_out_store, 1), lambda n, j: (0, 0)),
            ],
            out_specs=pl.BlockSpec((None, C_out_store, m_bn), lambda n, j: (n, 0, j)),
        ),
        compiler_params=pltpu.CompilerParams(
            dimension_semantics=("parallel", "parallel")),
        input_output_aliases={0: 0},
    )(y, scale, shift)

    # already NCHW layout: just (no-op) slice + free reshape, no transpose pass
    out = y_bn[:, :C_out, :].reshape(N, C_out, H_out, W_out)
    return out.astype(x.dtype)


def reference(x, weight, gamma, beta, *, stride, padding, eps):
    y = lax.conv_general_dilated(
        x, weight, (stride, stride),
        [(padding, padding), (padding, padding)],
        dimension_numbers=("NCHW", "OIHW", "NCHW"))
    mean = y.mean(axis=(0, 2, 3), keepdims=True)
    var = ((y - mean) ** 2).mean(axis=(0, 2, 3), keepdims=True)
    return ((y - mean) * lax.rsqrt(var + eps) * gamma.reshape(1, -1, 1, 1)
            + beta.reshape(1, -1, 1, 1))


if __name__ == "__main__":
    def check(N, C_in, H, W, C_out, KH, KW, stride, padding, compute_dtype, atol, rtol):
        key = jax.random.PRNGKey(0)
        kx, kw_, kg, kb = jax.random.split(key, 4)
        x = jax.random.normal(kx, (N, C_in, H, W), dtype=jnp.float32)
        weight = jax.random.normal(kw_, (C_out, C_in, KH, KW), dtype=jnp.float32) * 0.1
        gamma = 1.0 + 0.1 * jax.random.normal(kg, (C_out,), dtype=jnp.float32)
        beta = 0.1 * jax.random.normal(kb, (C_out,), dtype=jnp.float32)

        fwd = jax.jit(functools.partial(basic_conv_forward, stride=stride,
                                        padding=padding, eps=1e-5,
                                        compute_dtype=compute_dtype))
        out = jax.block_until_ready(fwd(x, weight, gamma, beta))
        ref = reference(x, weight, gamma, beta, stride=stride, padding=padding, eps=1e-5)
        assert out.shape == ref.shape, (out.shape, ref.shape)
        err = float(jnp.max(jnp.abs(out - ref)))
        assert jnp.allclose(out, ref, atol=atol, rtol=rtol), err

    # BasicConv(4, 8, kernel_size=3, stride=1, padding=1) at the suggested small shape.
    check(2, 4, 16, 16, 8, 3, 3, 1, 1, jnp.float32, 1e-4, 1e-4)
    # Larger spatial extent exercises the M-tile grid axis (2 row-tiles per image).
    check(2, 4, 32, 32, 16, 3, 3, 1, 1, jnp.float32, 1e-4, 1e-4)
    # bf16 MXU inputs (recommended on v5e/v6e/v7x); f32 accumulation + f32 epilogue.
    check(2, 4, 16, 16, 8, 3, 3, 1, 1, jnp.bfloat16, 5e-2, 5e-2)

    print("KERNEL_OK")
</pallas_src>

<mosaic_0001>
module attributes {stable_mosaic.version = 11 : i64} {
  func.func @conv_stats_kernel(%arg0: i32, %arg1: i32, %arg2: i32, %arg3: memref<1x18x18x4xf32, #tpu.memory_space<vmem>>, %arg4: memref<36x128xf32, #tpu.memory_space<vmem>>, %arg5: memref<1x8x256xf32, #tpu.memory_space<vmem>>, %arg6: memref<1x1x2x128xf32, #tpu.memory_space<vmem>>, %arg7: memref<256x36xf32, #tpu.memory_space<vmem>>) attributes {dimension_semantics = [#tpu.dimension_semantics<parallel>, #tpu.dimension_semantics<parallel>, #tpu.dimension_semantics<parallel>], iteration_bounds = array<i64: 2, 1, 1>, scalar_prefetch = 0 : i64, scratch_operands = 1 : i64, tpu.core_type = #tpu.core_type<tc>, window_params = [{transform_indices = @transform_0, window_bounds = array<i64: 1, 18, 18, 4>}, {transform_indices = @transform_1, window_bounds = array<i64: 36, 128>}, {transform_indices = @transform_2, window_bounds = array<i64: 1, 8, 256>}, {transform_indices = @transform_3, window_bounds = array<i64: 1, 1, 2, 128>}]} {
    %c16_i32 = arith.constant 16 : i32
    %0 = arith.muli %arg2, %c16_i32 : i32
    %c1_i32 = arith.constant 1 : i32
    %1 = arith.muli %0, %c1_i32 : i32
    %2 = tpu.assume_multiple %1, 8 : i32
    %c0_i32 = arith.constant 0 : i32
    %3 = arith.addi %2, %c0_i32 : i32
    %c0 = arith.constant 0 : index
    %4 = arith.index_cast %3 : i32 to index
    %c0_0 = arith.constant 0 : index
    %c0_1 = arith.constant 0 : index
    %5 = vector.load %arg3[%c0, %4, %c0_0, %c0_1] : memref<1x18x18x4xf32, #tpu.memory_space<vmem>>, vector<1x16x16x4xf32>
    %6 = vector.shape_cast %5 : vector<1x16x16x4xf32> to vector<16x16x4xf32>
    %7 = vector.shape_cast %6 : vector<16x16x4xf32> to vector<256x4xf32>
    %c0_2 = arith.constant 0 : index
    %c0_3 = arith.constant 0 : index
    %8 = vector.load %arg7[%c0_2, %c0_3] : memref<256x36xf32, #tpu.memory_space<vmem>>, vector<256x4xf32>
    tpu.vector_store %arg7[%c0_2, %c0_3], %7 {strides = array<i32>} : memref<256x36xf32, #tpu.memory_space<vmem>>, vector<256x4xf32>,
    %c0_i32_4 = arith.constant 0 : i32
    %9 = arith.addi %2, %c0_i32_4 : i32
    %c0_5 = arith.constant 0 : index
    %10 = arith.index_cast %9 : i32 to index
    %c1 = arith.constant 1 : index
    %c0_6 = arith.constant 0 : index
    %11 = vector.load %arg3[%c0_5, %10, %c1, %c0_6] : memref<1x18x18x4xf32, #tpu.memory_space<vmem>>, vector<1x16x16x4xf32>
    %12 = vector.shape_cast %11 : vector<1x16x16x4xf32> to vector<16x16x4xf32>
    %13 = vector.shape_cast %12 : vector<16x16x4xf32> to vector<256x4xf32>
    %c0_7 = arith.constant 0 : index
    %c4 = arith.constant 4 : index
    %14 = vector.load %arg7[%c0_7, %c4] : memref<256x36xf32, #tpu.memory_space<vmem>>, vector<256x4xf32>
    tpu.vector_store %arg7[%c0_7, %c4], %13 {strides = array<i32>} : memref<256x36xf32, #tpu.memory_space<vmem>>, vector<256x4xf32>,
    %c0_i32_8 = arith.constant 0 : i32
    %15 = arith.addi %2, %c0_i32_8 : i32
    %c0_9 = arith.constant 0 : index
    %16 = arith.index_cast %15 : i32 to index
    %c2 = arith.constant 2 : index
    %c0_10 = arith.constant 0 : index
    %17 = vector.load %arg3[%c0_9, %16, %c2, %c0_10] : memref<1x18x18x4xf32, #tpu.memory_space<vmem>>, vector<1x16x16x4xf32>
    %18 = vector.shape_cast %17 : vector<1x16x16x4xf32> to vector<16x16x4xf32>
    %19 = vector.shape_cast %18 : vector<16x16x4xf32> to vector<256x4xf32>
    %c0_11 = arith.constant 0 : index
    %c8 = arith.constant 8 : index
    %20 = vector.load %arg7[%c0_11, %c8] : memref<256x36xf32, #tpu.memory_space<vmem>>, vector<256x4xf32>
    tpu.vector_store %arg7[%c0_11, %c8], %19 {strides = array<i32>} : memref<256x36xf32, #tpu.memory_space<vmem>>, vector<256x4xf32>,
    %c1_i32_12 = arith.constant 1 : i32
    %21 = arith.addi %2, %c1_i32_12 : i32
    %c0_13 = arith.constant 0 : index
    %22 = arith.index_cast %21 : i32 to index
    %c0_14 = arith.constant 0 : index
    %c0_15 = arith.constant 0 : index
    %23 = vector.load %arg3[%c0_13, %22, %c0_14, %c0_15] : memref<1x18x18x4xf32, #tpu.memory_space<vmem>>, vector<1x16x16x4xf32>
    %24 = vector.shape_cast %23 : vector<1x16x16x4xf32> to vector<16x16x4xf32>
    %25 = vector.shape_cast %24 : vector<16x16x4xf32> to vector<256x4xf32>
    %c0_16 = arith.constant 0 : index
    %c12 = arith.constant 12 : index
    %26 = vector.load %arg7[%c0_16, %c12] : memref<256x36xf32, #tpu.memory_space<vmem>>, vector<256x4xf32>
    tpu.vector_store %arg7[%c0_16, %c12], %25 {strides = array<i32>} : memref<256x36xf32, #tpu.memory_space<vmem>>, vector<256x4xf32>,
    %c1_i32_17 = arith.constant 1 : i32
    %27 = arith.addi %2, %c1_i32_17 : i32
    %c0_18 = arith.constant 0 : index
    %28 = arith.index_cast %27 : i32 to index
    %c1_19 = arith.constant 1 : index
    %c0_20 = arith.constant 0 : index
    %29 = vector.load %arg3[%c0_18, %28, %c1_19, %c0_20] : memref<1x18x18x4xf32, #tpu.memory_space<vmem>>, vector<1x16x16x4xf32>
    %30 = vector.shape_cast %29 : vector<1x16x16x4xf32> to vector<16x16x4xf32>
    %31 = vector.shape_cast %30 : vector<16x16x4xf32> to vector<256x4xf32>
    %c0_21 = arith.constant 0 : index
    %c16 = arith.constant 16 : index
    %32 = vector.load %arg7[%c0_21, %c16] : memref<256x36xf32, #tpu.memory_space<vmem>>, vector<256x4xf32>
    tpu.vector_store %arg7[%c0_21, %c16], %31 {strides = array<i32>} : memref<256x36xf32, #tpu.memory_space<vmem>>, vector<256x4xf32>,
    %c1_i32_22 = arith.constant 1 : i32
    %33 = arith.addi %2, %c1_i32_22 : i32
    %c0_23 = arith.constant 0 : index
    %34 = arith.index_cast %33 : i32 to index
    %c2_24 = arith.constant 2 : index
    %c0_25 = arith.constant 0 : index
    %35 = vector.load %arg3[%c0_23, %34, %c2_24, %c0_25] : memref<1x18x18x4xf32, #tpu.memory_space<vmem>>, vector<1x16x16x4xf32>
    %36 = vector.shape_cast %35 : vector<1x16x16x4xf32> to vector<16x16x4xf32>
    %37 = vector.shape_cast %36 : vector<16x16x4xf32> to vector<256x4xf32>
    %c0_26 = arith.constant 0 : index
    %c20 = arith.constant 20 : index
    %38 = vector.load %arg7[%c0_26, %c20] : memref<256x36xf32, #tpu.memory_space<vmem>>, vector<256x4xf32>
    tpu.vector_store %arg7[%c0_26, %c20], %37 {strides = array<i32>} : memref<256x36xf32, #tpu.memory_space<vmem>>, vector<256x4xf32>,
    %c2_i32 = arith.constant 2 : i32
    %39 = arith.addi %2, %c2_i32 : i32
    %c0_27 = arith.constant 0 : index
    %40 = arith.index_cast %39 : i32 to index
    %c0_28 = arith.constant 0 : index
    %c0_29 = arith.constant 0 : index
    %41 = vector.load %arg3[%c0_27, %40, %c0_28, %c0_29] : memref<1x18x18x4xf32, #tpu.memory_space<vmem>>, vector<1x16x16x4xf32>
    %42 = vector.shape_cast %41 : vector<1x16x16x4xf32> to vector<16x16x4xf32>
    %43 = vector.shape_cast %42 : vector<16x16x4xf32> to vector<256x4xf32>
    %c0_30 = arith.constant 0 : index
    %c24 = arith.constant 24 : index
    %44 = vector.load %arg7[%c0_30, %c24] : memref<256x36xf32, #tpu.memory_space<vmem>>, vector<256x4xf32>
    tpu.vector_store %arg7[%c0_30, %c24], %43 {strides = array<i32>} : memref<256x36xf32, #tpu.memory_space<vmem>>, vector<256x4xf32>,
    %c2_i32_31 = arith.constant 2 : i32
    %45 = arith.addi %2, %c2_i32_31 : i32
    %c0_32 = arith.constant 0 : index
    %46 = arith.index_cast %45 : i32 to index
    %c1_33 = arith.constant 1 : index
    %c0_34 = arith.constant 0 : index
    %47 = vector.load %arg3[%c0_32, %46, %c1_33, %c0_34] : memref<1x18x18x4xf32, #tpu.memory_space<vmem>>, vector<1x16x16x4xf32>
    %48 = vector.shape_cast %47 : vector<1x16x16x4xf32> to vector<16x16x4xf32>
    %49 = vector.shape_cast %48 : vector<16x16x4xf32> to vector<256x4xf32>
    %c0_35 = arith.constant 0 : index
    %c28 = arith.constant 28 : index
    %50 = vector.load %arg7[%c0_35, %c28] : memref<256x36xf32, #tpu.memory_space<vmem>>, vector<256x4xf32>
    tpu.vector_store %arg7[%c0_35, %c28], %49 {strides = array<i32>} : memref<256x36xf32, #tpu.memory_space<vmem>>, vector<256x4xf32>,
    %c2_i32_36 = arith.constant 2 : i32
    %51 = arith.addi %2, %c2_i32_36 : i32
    %c0_37 = arith.constant 0 : index
    %52 = arith.index_cast %51 : i32 to index
    %c2_38 = arith.constant 2 : index
    %c0_39 = arith.constant 0 : index
    %53 = vector.load %arg3[%c0_37, %52, %c2_38, %c0_39] : memref<1x18x18x4xf32, #tpu.memory_space<vmem>>, vector<1x16x16x4xf32>
    %54 = vector.shape_cast %53 : vector<1x16x16x4xf32> to vector<16x16x4xf32>
    %55 = vector.shape_cast %54 : vector<16x16x4xf32> to vector<256x4xf32>
    %c0_40 = arith.constant 0 : index
    %c32 = arith.constant 32 : index
    %56 = vector.load %arg7[%c0_40, %c32] : memref<256x36xf32, #tpu.memory_space<vmem>>, vector<256x4xf32>
    tpu.vector_store %arg7[%c0_40, %c32], %55 {strides = array<i32>} : memref<256x36xf32, #tpu.memory_space<vmem>>, vector<256x4xf32>,
    %c0_41 = arith.constant 0 : index
    %c0_42 = arith.constant 0 : index
    %57 = vector.load %arg7[%c0_41, %c0_42] : memref<256x36xf32, #tpu.memory_space<vmem>>, vector<256x36xf32>
    %c0_43 = arith.constant 0 : index
    %c0_44 = arith.constant 0 : index
    %58 = vector.load %arg4[%c0_43, %c0_44] : memref<36x128xf32, #tpu.memory_space<vmem>>, vector<36x128xf32>
    %cst = arith.constant dense<0.000000e+00> : vector<256x128xf32>
    %59 = tpu.matmul %57, %58, %cst {dimension_numbers = #tpu.dot_dimension_numbers<[1], [0], [0], [1], [0, 0, 1, 1], [], []>} : vector<256x36xf32>, vector<36x128xf32>, vector<256x128xf32> -> vector<256x128xf32>
    %cst_45 = arith.constant dense<0.000000e+00> : vector<128xf32>
    %60 = vector.multi_reduction <add>, %59, %cst_45 [0] : vector<256x128xf32> to vector<128xf32>
    %61 = vector.shape_cast %60 : vector<128xf32> to vector<1x128xf32>
    %c0_46 = arith.constant 0 : index
    %c0_47 = arith.constant 0 : index
    %c0_48 = arith.constant 0 : index
    %c0_49 = arith.constant 0 : index
    %62 = vector.load %arg6[%c0_46, %c0_47, %c0_48, %c0_49] : memref<1x1x2x128xf32, #tpu.memory_space<vmem>>, vector<1x1x1x128xf32>
    %63 = vector.shape_cast %62 : vector<1x1x1x128xf32> to vector<1x128xf32>
    %64 = vector.shape_cast %61 : vector<1x128xf32> to vector<1x1x1x128xf32>
    tpu.vector_store %arg6[%c0_46, %c0_47, %c0_48, %c0_49], %64 {strides = array<i32>} : memref<1x1x2x128xf32, #tpu.memory_space<vmem>>, vector<1x1x1x128xf32>,
    %65 = arith.mulf %59, %59 : vector<256x128xf32>
    %cst_50 = arith.constant dense<0.000000e+00> : vector<128xf32>
    %66 = vector.multi_reduction <add>, %65, %cst_50 [0] : vector<256x128xf32> to vector<128xf32>
    %67 = vector.shape_cast %66 : vector<128xf32> to vector<1x128xf32>
    %c0_51 = arith.constant 0 : index
    %c0_52 = arith.constant 0 : index
    %c1_53 = arith.constant 1 : index
    %c0_54 = arith.constant 0 : index
    %68 = vector.load %arg6[%c0_51, %c0_52, %c1_53, %c0_54] : memref<1x1x2x128xf32, #tpu.memory_space<vmem>>, vector<1x1x1x128xf32>
    %69 = vector.shape_cast %68 : vector<1x1x1x128xf32> to vector<1x128xf32>
    %70 = vector.shape_cast %67 : vector<1x128xf32> to vector<1x1x1x128xf32>
    tpu.vector_store %arg6[%c0_51, %c0_52, %c1_53, %c0_54], %70 {strides = array<i32>} : memref<1x1x2x128xf32, #tpu.memory_space<vmem>>, vector<1x1x1x128xf32>,
    %71 = tpu.iota {dimensions = array<i32: 0>} : vector<8x128xi32>
    %72 = tpu.iota {dimensions = array<i32: 1>} : vector<8x128xi32>
    %73 = arith.cmpi eq, %71, %72 : vector<8x128xi32>
    %74 = arith.extui %73 : vector<8x128xi1> to vector<8x128xi32>
    %75 = arith.sitofp %74 : vector<8x128xi32> to vector<8x128xf32>
    %cst_55 = arith.constant dense<0.000000e+00> : vector<8x256xf32>
    %76 = tpu.matmul %75, %59, %cst_55 {dimension_numbers = #tpu.dot_dimension_numbers<[1], [1], [0], [0], [0, 0, 1, 0], [], []>} : vector<8x128xf32>, vector<256x128xf32>, vector<8x256xf32> -> vector<8x256xf32>
    %c0_56 = arith.constant 0 : index
    %c0_57 = arith.constant 0 : index
    %c0_58 = arith.constant 0 : index
    %77 = vector.load %arg5[%c0_56, %c0_57, %c0_58] : memref<1x8x256xf32, #tpu.memory_space<vmem>>, vector<1x8x256xf32>
    %78 = vector.shape_cast %77 : vector<1x8x256xf32> to vector<8x256xf32>
    %79 = vector.shape_cast %76 : vector<8x256xf32> to vector<1x8x256xf32>
    tpu.vector_store %arg5[%c0_56, %c0_57, %c0_58], %79 {strides = array<i32>} : memref<1x8x256xf32, #tpu.memory_space<vmem>>, vector<1x8x256xf32>,
    return
  }
  func.func @transform_0(%arg0: i32, %arg1: i32, %arg2: i32) -> (i32, i32, i32, i32) {
    %c0_i32 = arith.constant 0 : i32
    %c0_i32_0 = arith.constant 0 : i32
    %c0_i32_1 = arith.constant 0 : i32
    %c0_i32_2 = arith.constant 0 : i32
    return %arg0, %c0_i32, %c0_i32_0, %c0_i32_1 : i32, i32, i32, i32
  }
  func.func @transform_1(%arg0: i32, %arg1: i32, %arg2: i32) -> (i32, i32) {
    %c0_i32 = arith.constant 0 : i32
    %c0_i32_0 = arith.constant 0 : i32
    return %c0_i32, %arg1 : i32, i32
  }
  func.func @transform_2(%arg0: i32, %arg1: i32, %arg2: i32) -> (i32, i32, i32) {
    %c0_i32 = arith.constant 0 : i32
    return %arg0, %arg1, %arg2 : i32, i32, i32
  }
  func.func @transform_3(%arg0: i32, %arg1: i32, %arg2: i32) -> (i32, i32, i32, i32) {
    %c0_i32 = arith.constant 0 : i32
    %c0_i32_0 = arith.constant 0 : i32
    return %arg0, %arg2, %c0_i32, %arg1 : i32, i32, i32, i32
  }
}

module attributes {stable_mosaic.version = 11 : i64} {
  func.func @bn_apply_kernel(%arg0: i32, %arg1: i32, %arg2: memref<1x8x256xf32, #tpu.memory_space<vmem>>, %arg3: memref<8x1xf32, #tpu.memory_space<vmem>>, %arg4: memref<8x1xf32, #tpu.memory_space<vmem>>, %arg5: memref<1x8x256xf32, #tpu.memory_space<vmem>>) attributes {dimension_semantics = [#tpu.dimension_semantics<parallel>, #tpu.dimension_semantics<parallel>], iteration_bounds = array<i64: 2, 1>, scalar_prefetch = 0 : i64, scratch_operands = 0 : i64, tpu.core_type = #tpu.core_type<tc>, window_params = [{transform_indices = @transform_0, window_bounds = array<i64: 1, 8, 256>}, {pipeline_mode = #tpu.pipeline_mode<synchronous>, transform_indices = @transform_1, window_bounds = array<i64: 8, 1>}, {pipeline_mode = #tpu.pipeline_mode<synchronous>, transform_indices = @transform_2, window_bounds = array<i64: 8, 1>}, {transform_indices = @transform_3, window_bounds = array<i64: 1, 8, 256>}]} {
    %c0 = arith.constant 0 : index
    %c0_0 = arith.constant 0 : index
    %c0_1 = arith.constant 0 : index
    %0 = vector.load %arg2[%c0, %c0_0, %c0_1] : memref<1x8x256xf32, #tpu.memory_space<vmem>>, vector<1x8x256xf32>
    %1 = vector.shape_cast %0 : vector<1x8x256xf32> to vector<8x256xf32>
    %c0_2 = arith.constant 0 : index
    %c0_3 = arith.constant 0 : index
    %2 = vector.load %arg3[%c0_2, %c0_3] : memref<8x1xf32, #tpu.memory_space<vmem>>, vector<8x1xf32>
    %3 = vector.broadcast %2 : vector<8x1xf32> to vector<8x256xf32>
    %4 = arith.mulf %1, %3 : vector<8x256xf32>
    %c0_4 = arith.constant 0 : index
    %c0_5 = arith.constant 0 : index
    %5 = vector.load %arg4[%c0_4, %c0_5] : memref<8x1xf32, #tpu.memory_space<vmem>>, vector<8x1xf32>
    %6 = vector.broadcast %5 : vector<8x1xf32> to vector<8x256xf32>
    %7 = arith.addf %4, %6 : vector<8x256xf32>
    %c0_6 = arith.constant 0 : index
    %c0_7 = arith.constant 0 : index
    %c0_8 = arith.constant 0 : index
    %8 = vector.load %arg5[%c0_6, %c0_7, %c0_8] : memref<1x8x256xf32, #tpu.memory_space<vmem>>, vector<1x8x256xf32>
    %9 = vector.shape_cast %8 : vector<1x8x256xf32> to vector<8x256xf32>
    %10 = vector.shape_cast %7 : vector<8x256xf32> to vector<1x8x256xf32>
    tpu.vector_store %arg5[%c0_6, %c0_7, %c0_8], %10 {strides = array<i32>} : memref<1x8x256xf32, #tpu.memory_space<vmem>>, vector<1x8x256xf32>,
    return
  }
  func.func @transform_0(%arg0: i32, %arg1: i32) -> (i32, i32, i32) {
    %c0_i32 = arith.constant 0 : i32
    %c0_i32_0 = arith.constant 0 : i32
    return %arg0, %c0_i32, %arg1 : i32, i32, i32
  }
  func.func @transform_1(%arg0: i32, %arg1: i32) -> (i32, i32) {
    %c0_i32 = arith.constant 0 : i32
    %c0_i32_0 = arith.constant 0 : i32
    %c0_i32_1 = arith.constant 0 : i32
    return %c0_i32, %c0_i32_0 : i32, i32
  }
  func.func @transform_2(%arg0: i32, %arg1: i32) -> (i32, i32) {
    %c0_i32 = arith.constant 0 : i32
    %c0_i32_0 = arith.constant 0 : i32
    %c0_i32_1 = arith.constant 0 : i32
    return %c0_i32, %c0_i32_0 : i32, i32
  }
  func.func @transform_3(%arg0: i32, %arg1: i32) -> (i32, i32, i32) {
    %c0_i32 = arith.constant 0 : i32
    %c0_i32_0 = arith.constant 0 : i32
    return %arg0, %c0_i32, %arg1 : i32, i32, i32
  }
}

</mosaic_0001>

<bundles_post_ra>
// kernel: basic_conv_forward.3
= control target key start
LH: loop header
LB: loop body
LE: loop exit
PB: predicated region body
PF: predicated region fallthrough
CT: control target
= control target key end

     0   :  { %s401_s12 = smov 0   ;;  %s403_s13 = smov 0   ;;  %s437_s0 = inlined_call_operand.vmem [shape: f32[2,8,256], index: 0, kind: input, shape index: {}, may-alias: {0,3}]   ;;  %s438_s1 = inlined_call_operand.vmem [shape: f32[8,1], index: 1, kind: input, shape index: {}]   ;;  %s439_s2 = inlined_call_operand.vmem [shape: f32[8,1], index: 2, kind: input, shape index: {}]   ;;  %s440_s3 = inlined_call_operand.vmem [shape: f32[2,8,256], index: 3, kind: output, shape index: {}, may-alias: {0,3}]  }
   0x1   :  { %s405_s14 = smov 0  }
   0x2 LB: > { %s25_s15 = sadd.s32 1, %s374_s13  ;;  %p321_p0 = scmp.ge.s32.totalorder %s378_s14, 1  ;;  %s378_s14 = sphi %s405_s14, %s13_s14   ;;  %s374_s13 = sphi %s403_s13, %s442_s13   ;;  %s370_s12 = sphi %s401_s12, %s441_s12  }
   0x3   : > { %p27_p1 = scmp.ge.s32.totalorder %s25_s15, 2  ;;  %p158_p2 = scmp.lt.s32.totalorder %s378_s14, 3 }
   0x5   : > { %s444_s15 = smov (%p27_p1, %s25_s15), 0  ;;  %p159_p3 = pnand %p321_p0, %p158_p2 }
   0x6   : > { %v212_v0 = vld [vmem:[%s438_s1] sm:$0xff] (!%p159_p3)  ;;  %v380_v1 = vmov (!%p159_p3), 0   ;;  %p191_p4 = scmp.lt.s32.totalorder (!%p159_p3), %s370_s12, 1 }
   0x7   : > { %162 = sbr.rel (%p159_p3) target bundleno = 143 (0x8f), region = 32  ;;  %355 = vset.pattern.permute.xlu0 (!%p159_p3), %v380_v1  ;;  %v220_v2 = vld [vmem:[%s439_s2] sm:$0xff] (!%p159_p3) }
   0x8   : > { %215 = vperm.xlu0 (!%p159_p3), %355, %v212_v0  }
   0xc   : > { %223 = vperm.xlu0 (!%p159_p3), %355, %v220_v2  }
   0xe   : > { %s446_s12 = smov (!%p191_p4, %s370_s12), 1 }
   0xf   : > { %s328_s20 = sshll.u32 %s446_s12, 4 }
  0x10   : > { %s198_s23 = scalar_lea.vmem %s437_s0, %s328_s20  ;;  %s208_s26 = scalar_lea.vmem %s440_s3, %s328_s20 }
  0x11   : > { %v210_v4 = vld [vmem:[%s198_s23] sm:$0xff]  ;;  %v211_v5 = vld [vmem:[%s198_s23 + $0x8] sm:$0xff] }
  0x87   : > { %v216_v3 = vpop.permute.xlu0 %215 }
  0x88   : > { %v218_v6 = vmul.f32 %v216_v3, %v210_v4  ;;  %v219_v7 = vmul.f32 %v216_v3, %v211_v5 }
  0x8b   : > { %v224_v8 = vpop.permute.xlu0 %223 }
  0x8c   : > { %v226_v9 = vadd.f32 %v224_v8, %v218_v6  ;;  %v227_v10 = vadd.f32 %v224_v8, %v219_v7 }
  0x8e   : > { %228 = vst [vmem:[%s208_s26] sm:$0xff] %v226_v9  ;;  %229 = vst [vmem:[%s208_s26 + $0x8] sm:$0xff] %v227_v10 }
  0x8f PF: > { %s13_s14 = sadd.s32 1, %s378_s14   ;;  %s441_s12 = smov %s374_s13 }
  0x90   : > { %p10_p5 = scmp.ge.s32.totalorder %s13_s14, 4   ;;  %s442_s13 = smov %s444_s15 }
  0x92   :  { %12 = sbr.rel (!%p10_p5) target bundleno = 2 (0x2), region = 62 }

// kernel: basic_conv_forward.2
= control target key start
LH: loop header
LB: loop body
LE: loop exit
PB: predicated region body
PF: predicated region fallthrough
CT: control target
= control target key end

     0   :  { %s3096_s12 = smov 0   ;;  %s3098_s13 = smov 0   ;;  %s4216_s0 = inlined_call_operand.vmem [shape: f32[2,18,18,4], index: 0, kind: input, shape index: {}]   ;;  %s4217_s1 = inlined_call_operand.vmem [shape: f32[36,128], index: 1, kind: input, shape index: {}]   ;;  %s4218_s2 = inlined_call_operand.vmem [shape: f32[2,8,256], index: 2, kind: output, shape index: {0}]   ;;  %s4219_s3 = inlined_call_operand.vmem [shape: f32[2,1,2,128], index: 3, kind: output, shape index: {1}]  }
   0x1   :  { %s3100_s14 = smov 0  }
   0x2 LB: > { %s33_s15 = sadd.s32 1, %s3061_s13  ;;  %p2605_p0 = scmp.ge.s32.totalorder %s3065_s14, 1  ;;  %s3065_s14 = sphi %s3100_s14, %s14_s14   ;;  %s3061_s13 = sphi %s3098_s13, %s4221_s13   ;;  %s3057_s12 = sphi %s3096_s12, %s4220_s12  }
   0x3   : > { %p35_p1 = scmp.ge.s32.totalorder %s33_s15, 2  ;;  %p176_p2 = scmp.lt.s32.totalorder %s3065_s14, 3 }
   0x5   : > { %s4223_s15 = smov (%p35_p1, %s33_s15), 0  ;;  %p177_p3 = pnand %p2605_p0, %p176_p2 }
   0x6   : > { %p222_p4 = scmp.lt.s32.totalorder (!%p177_p3), %s3057_s12, 1  ;;  %s3067_s20 = smov (!%p177_p3), 8   ;;  %vm290_vm0 = vcmask (!%p177_p3), 31744   ;;  %v1905_v22 = vld [vmem:[%s4217_s1] sm:$0xff] (!%p177_p3)  ;;  %v1906_v23 = vld [vmem:[%s4217_s1 + $0x8] sm:$0xff] (!%p177_p3)  ;;  %v1907_v26 = vld [vmem:[%s4217_s1 + $0x10] sm:$0xff] (!%p177_p3) }
   0x7   : > { %180 = sbr.rel (%p177_p3) target bundleno = 1089 (0x441), region = 28  ;;  %s3068_s21 = smov (!%p177_p3), 4   ;;  %v2969_v25 = vpack.c.bf16 (!%p177_p3), %v1906_v23, %v1905_v22  ;;  %v1908_v27 = vld [vmem:[%s4217_s1 + $0x18] sm:$0xff] (!%p177_p3)  ;;  %v1909_v31 = vld [vmem:[%s4217_s1 + $0x20] sm:$0xf] (!%p177_p3)  ;;  %vm2007_vm1 = vcmask (!%p177_p3), 1043456  }
   0x8   : > { %s3069_s22 = smov (!%p177_p3), 12   ;;  %s3070_s23 = smov (!%p177_p3), 16   ;;  %v2973_v28 = vpack.c.bf16 (!%p177_p3), %v1908_v27, %v1907_v26  ;;  %vm483_vm2 = vcmask (!%p177_p3), 64544   ;;  %vm676_vm3 = vcmask (!%p177_p3), 97344   ;;  %vm872_vm4 = vcmask (!%p177_p3), 130144  }
   0x9   : > { %s3071_s24 = smov (!%p177_p3), 20   ;;  %s3072_s25 = smov (!%p177_p3), 24   ;;  %2970 = vmatprep.subr.bf16.mxu0 (!%p177_p3), %v2969_v25  ;;  %vm1065_vm5 = vcmask (!%p177_p3), 162944   ;;  %vm1258_vm6 = vcmask (!%p177_p3), 195744   ;;  %vm1454_vm7 = vcmask (!%p177_p3), 228544   ;;  %vm1647_vm8 = vcmask (!%p177_p3), 261344  }
   0xa   : > { %s3073_s30 = smov (!%p177_p3), 28   ;;  %2972 = vmatpush3.bf16.msra.mxu0 (!%p177_p3), %v2969_v25  ;;  %s3074_s8 = smov (!%p177_p3), 32   ;;  %vm1840_vm9 = vcmask (!%p177_p3), 294144   ;;  %vm1910_vm10 = vcmask (!%p177_p3), 293888  }
   0xb   : > { %2974 = vmatprep.subr.bf16.mxu0 (!%p177_p3), %v2973_v28 }
   0xe   : > { %s4225_s12 = smov (!%p222_p4, %s3057_s12), 1  ;;  %2976 = vmatpush3.bf16.msra.mxu0 %v2973_v28 }
   0xf   : > { %s3009_s16 = smul.u32 432, %s4225_s12  ;;  %2919 = vmatprep.subr.msk.mxu0 %vm2007_vm1, %v1909_v31  ;;  %s2609_s11 = sshll.u32 %s4225_s12, 1 }
  0x10   : > { %s254_s18 = scalar_lea.vmem %s4219_s3, %s2609_s11 }
  0x11   : > { %s3120_s19 = scalar_lea.vmem %s4216_s0, %s3009_s16 }
  0x12   : > { %v516_v0 = vld [vmem:[%s3120_s19 + $0x2] sm:$0xff]  ;;  %v517_v3 = vld [vmem:[%s3120_s19 + $0xa] sm:$0xff]  ;;  %v2610_v5 = vld [vmem:[%s3120_s19 + $0x18] sm:$0xff]  ;;  %2920 = vmatpush3.msk.msra.mxu0 %vm2007_vm1, %v1909_v31 }
  0x13   : > { %v323_v1 = vld [vmem:[%s3120_s19 + $0x1] sm:$0xff]  ;;  %580 = vrot.lane.b32.xlu1 %v516_v0, %s3067_s20  ;;  %v324_v4 = vld [vmem:[%s3120_s19 + $0x9] sm:$0xff]  ;;  %293 = vst.msk [vmem:[#allocation2 + $0x10] sm:$0xff] %vm290_vm0, %v2610_v5  ;;  %v2707_v7 = vld [vmem:[%s3120_s19 + $0x38] sm:$0xff] }
  0x14   : > { %387 = vrot.lane.b32.xlu0 %v323_v1, %s3068_s21  ;;  %v2611_v2 = vld [vmem:[%s3120_s19 + $0x20] sm:$0xff]  ;;  %v2706_v6 = vld [vmem:[%s3120_s19 + $0x30] sm:$0xff]  ;;  %296 = vst.msk [vmem:[#allocation2 + $0x28] sm:$0xff] %vm290_vm0, %v2707_v7  ;;  %v3139_v8 = vld [vmem:[%s3120_s19 + $0x48] sm:$0xff] }
  0x15   : > { %294 = vst.msk [vmem:[#allocation2 + $0x18] sm:$0xff] %vm290_vm0, %v2611_v2  ;;  %295 = vst.msk [vmem:[#allocation2 + $0x20] sm:$0xff] %vm290_vm0, %v2706_v6  ;;  %v3142_v9 = vld [vmem:[%s3120_s19 + $0x50] sm:$0xff]  ;;  %v3149_v10 = vld [vmem:[%s3120_s19 + $0x60] sm:$0xff] }
  0x16   : > { %297 = vst.msk [vmem:[#allocation2 + $0x30] sm:$0xff] %vm290_vm0, %v3139_v8  ;;  %298 = vst.msk [vmem:[#allocation2 + $0x38] sm:$0xff] %vm290_vm0, %v3142_v9  ;;  %v3152_v11 = vld [vmem:[%s3120_s19 + $0x68] sm:$0xff]  ;;  %v325_v12 = vld [vmem:[%s3120_s19 + $0x19] sm:$0xff] }
  0x17   : > { %582 = vrot.lane.b32.xlu1 %v517_v3, %s3067_s20  ;;  %299 = vst.msk [vmem:[#allocation2 + $0x40] sm:$0xff] %vm290_vm0, %v3149_v10  ;;  %300 = vst.msk [vmem:[#allocation2 + $0x48] sm:$0xff] %vm290_vm0, %v3152_v11  ;;  %v258_v13 = vld [vmem:[%s3120_s19] sm:$0xff]  ;;  %v259_v14 = vld [vmem:[%s3120_s19 + $0x8] sm:$0xff] }
  0x18   : > { %389 = vrot.lane.b32.xlu0 %v324_v4, %s3068_s21  ;;  %291 = vst.msk [vmem:[#allocation2] sm:$0xff] %vm290_vm0, %v258_v13  ;;  %292 = vst.msk [vmem:[#allocation2 + $0x8] sm:$0xff] %vm290_vm0, %v259_v14  ;;  %v3166_v15 = vld [vmem:[%s3120_s19 + $0x78] sm:$0xff]  ;;  %v3169_v16 = vld [vmem:[%s3120_s19 + $0x80] sm:$0xff] }
  0x19   : > { %301 = vst.msk [vmem:[#allocation2 + $0x50] sm:$0xff] %vm290_vm0, %v3166_v15  ;;  %302 = vst.msk [vmem:[#allocation2 + $0x58] sm:$0xff] %vm290_vm0, %v3169_v16  ;;  %v2674_v17 = vld [vmem:[%s3120_s19 + $0x1a] sm:$0xff]  ;;  %v2675_v19 = vld [vmem:[%s3120_s19 + $0x22] sm:$0xff] }
  0x1a   : > { %v2643_v18 = vld [vmem:[%s3120_s19 + $0x21] sm:$0xff]  ;;  %v3185_v20 = vld [vmem:[%s3120_s19 + $0x90] sm:$0xff]  ;;  %v3201_v24 = vld [vmem:[%s3120_s19 + $0x98] sm:$0xff] }
  0x1b   : > { %778 = vrot.lane.b32.xlu1 %v2611_v2, %s3069_s22  ;;  %303 = vst.msk [vmem:[#allocation2 + $0x60] sm:$0xff] %vm290_vm0, %v3185_v20  ;;  %v2738_v21 = vld [vmem:[%s3120_s19 + $0x31] sm:$0xff]  ;;  %304 = vst.msk [vmem:[#allocation2 + $0x68] sm:$0xff] %vm290_vm0, %v3201_v24  ;;  %v2739_v30 = vld [vmem:[%s3120_s19 + $0x39] sm:$0xff] }
  0x1c   : > { %776 = vrot.lane.b32.xlu0 %v2610_v5, %s3069_s22  ;;  %v2770_v29 = vld [vmem:[%s3120_s19 + $0x32] sm:$0xff]  ;;  %v2771_v32 = vld [vmem:[%s3120_s19 + $0x3a] sm:$0xff]  ;;  %v3230_v33 = vld [vmem:[%s3120_s19 + $0xa8] sm:$0xff] }
  0x1d   : > { %305 = vst.msk [vmem:[#allocation2 + $0x70] sm:$0xff] %vm290_vm0, %v3230_v33  ;;  %v2740_v34 = vld [vmem:[%s3120_s19 + $0x49] sm:$0xff]  ;;  %v2741_v37 = vld [vmem:[%s3120_s19 + $0x51] sm:$0xff]  ;;  %v3264_v39 = vld [vmem:[%s3120_s19 + $0xc0] sm:$0xff] }
  0x1e   : > { %v3242_v35 = vld [vmem:[%s3120_s19 + $0xb0] sm:$0xff]  ;;  %307 = vst.msk [vmem:[#allocation2 + $0x80] sm:$0xff] %vm290_vm0, %v3264_v39  ;;  %v2742_v40 = vld [vmem:[%s3120_s19 + $0x61] sm:$0xff]  ;;  %v3305_v49 = vld [vmem:[%s3120_s19 + $0xd8] sm:$0xff] }
  0x1f   : > { %391 = vrot.lane.b32.xlu1 %v325_v12, %s3068_s21  ;;  %306 = vst.msk [vmem:[#allocation2 + $0x78] sm:$0xff] %vm290_vm0, %v3242_v35  ;;  %v2772_v36 = vld [vmem:[%s3120_s19 + $0x4a] sm:$0xff]  ;;  %v2773_v38 = vld [vmem:[%s3120_s19 + $0x52] sm:$0xff]  ;;  %v2774_v42 = vld [vmem:[%s3120_s19 + $0x62] sm:$0xff] }
  0x20   : > { %969 = vrot.lane.b32.xlu0 %v325_v12, %s3070_s23  ;;  %v3276_v41 = vld [vmem:[%s3120_s19 + $0xc8] sm:$0xff]  ;;  %309 = vst.msk [vmem:[#allocation2 + $0x90] sm:$0xff] %vm290_vm0, %v3305_v49  ;;  %v2744_v52 = vld [vmem:[%s3120_s19 + $0x79] sm:$0xff]  ;;  %v3348_v5 = vld [vmem:[%s3120_s19 + $0xf0] sm:$0xff] }
  0x21   : > { %308 = vst.msk [vmem:[#allocation2 + $0x88] sm:$0xff] %vm290_vm0, %v3276_v41  ;;  %v2743_v43 = vld [vmem:[%s3120_s19 + $0x69] sm:$0xff]  ;;  %v3318_v55 = vld [vmem:[%s3120_s19 + $0xe0] sm:$0xff]  ;;  %311 = vst.msk [vmem:[#allocation2 + $0xa0] sm:$0xff] %vm290_vm0, %v3348_v5 }
  0x22   : > { %v2775_v44 = vld [vmem:[%s3120_s19 + $0x6a] sm:$0xff]  ;;  %310 = vst.msk [vmem:[#allocation2 + $0x98] sm:$0xff] %vm290_vm0, %v3318_v55  ;;  %v2776_v58 = vld [vmem:[%s3120_s19 + $0x7a] sm:$0xff]  ;;  %v2777_v0 = vld [vmem:[%s3120_s19 + $0x82] sm:$0xff] }
  0x23   : > { %1162 = vrot.lane.b32.xlu1 %v2674_v17, %s3071_s24  ;;  %v2745_v59 = vld [vmem:[%s3120_s19 + $0x81] sm:$0xff] }
  0x24   : > { %971 = vrot.lane.b32.xlu0 %v2643_v18, %s3070_s23 }
  0x27   : > { %584 = vrot.lane.b32.xlu1 %v2674_v17, %s3067_s20  ;;  %v2778_v17 = vld [vmem:[%s3120_s19 + $0x92] sm:$0xff] }
  0x28   : > { %393 = vrot.lane.b32.xlu0 %v2643_v18, %s3068_s21  ;;  %v2747_v18 = vld [vmem:[%s3120_s19 + $0x99] sm:$0xff] }
  0x2b   : > { %1358 = vrot.lane.b32.xlu1 %v2706_v6, %s3072_s25 }
  0x2c   : > { %1164 = vrot.lane.b32.xlu0 %v2675_v19, %s3071_s24 }
  0x2f   : > { %780 = vrot.lane.b32.xlu1 %v2706_v6, %s3069_s22  ;;  %v3353_v6 = vld [vmem:[%s3120_s19 + $0xf8] sm:$0xff] }
  0x30   : > { %586 = vrot.lane.b32.xlu0 %v2675_v19, %s3067_s20  ;;  %312 = vst.msk [vmem:[#allocation2 + $0xa8] sm:$0xff] %vm290_vm0, %v3353_v6 }
  0x33   : > { %1551 = vrot.lane.b32.xlu1 %v2738_v21, %s3073_s30 }
  0x34   : > { %1360 = vrot.lane.b32.xlu0 %v2707_v7, %s3072_s25 }
  0x37   : > { %973 = vrot.lane.b32.xlu1 %v2738_v21, %s3070_s23 }
  0x38   : > { %782 = vrot.lane.b32.xlu0 %v2707_v7, %s3069_s22 }
  0x3b   : > { %1744 = vrot.lane.b32.xlu1 %v2770_v29, %s3074_s8 }
  0x3c   : > { %1553 = vrot.lane.b32.xlu0 %v2739_v30, %s3073_s30 }
  0x3f   : > { %975 = vrot.lane.b32.xlu1 %v2739_v30, %s3070_s23 }
  0x40   : > { %395 = vrot.lane.b32.xlu0 %v2738_v21, %s3068_s21 }
  0x43   : > { %1746 = vrot.lane.b32.xlu1 %v2771_v32, %s3074_s8 }
  0x44   : > { %1166 = vrot.lane.b32.xlu0 %v2770_v29, %s3071_s24 }
  0x47   : > { %588 = vrot.lane.b32.xlu1 %v2770_v29, %s3067_s20  ;;  %v3400_v29 = vld [vmem:[%s3120_s19 + $0x108] sm:$0xff] }
  0x48   : > { %397 = vrot.lane.b32.xlu0 %v2739_v30, %s3068_s21  ;;  %v3405_v30 = vld [vmem:[%s3120_s19 + $0x110] sm:$0xff]  ;;  %313 = vst.msk [vmem:[#allocation2 + $0xb0] sm:$0xff] %vm290_vm0, %v3400_v29 }
  0x49   : > { %314 = vst.msk [vmem:[#allocation2 + $0xb8] sm:$0xff] %vm290_vm0, %v3405_v30 }
  0x4b   : > { %1362 = vrot.lane.b32.xlu1 %v3139_v8, %s3072_s25 }
  0x4c   : > { %1168 = vrot.lane.b32.xlu0 %v2771_v32, %s3071_s24 }
  0x4f   : > { %784 = vrot.lane.b32.xlu1 %v3139_v8, %s3069_s22 }
  0x50   : > { %590 = vrot.lane.b32.xlu0 %v2771_v32, %s3067_s20 }
  0x53   : > { %1555 = vrot.lane.b32.xlu1 %v2740_v34, %s3073_s30 }
  0x54   : > { %1364 = vrot.lane.b32.xlu0 %v3142_v9, %s3072_s25 }
  0x57   : > { %977 = vrot.lane.b32.xlu1 %v2740_v34, %s3070_s23 }
  0x58   : > { %786 = vrot.lane.b32.xlu0 %v3142_v9, %s3069_s22 }
  0x5b   : > { %1748 = vrot.lane.b32.xlu1 %v2772_v36, %s3074_s8 }
  0x5c   : > { %1557 = vrot.lane.b32.xlu0 %v2741_v37, %s3073_s30 }
  0x5f   : > { %979 = vrot.lane.b32.xlu1 %v2741_v37, %s3070_s23 }
  0x60   : > { %399 = vrot.lane.b32.xlu0 %v2740_v34, %s3068_s21 }
  0x63   : > { %1750 = vrot.lane.b32.xlu1 %v2773_v38, %s3074_s8 }
  0x64   : > { %1170 = vrot.lane.b32.xlu0 %v2772_v36, %s3071_s24 }
  0x67   : > { %592 = vrot.lane.b32.xlu1 %v2772_v36, %s3067_s20 }
  0x68   : > { %401 = vrot.lane.b32.xlu0 %v2741_v37, %s3068_s21  ;;  %v2748_v37 = vld [vmem:[%s3120_s19 + $0xa9] sm:$0xff] }
  0x6b   : > { %1366 = vrot.lane.b32.xlu1 %v3149_v10, %s3072_s25 }
  0x6c   : > { %1172 = vrot.lane.b32.xlu0 %v2773_v38, %s3071_s24 }
  0x6f   : > { %788 = vrot.lane.b32.xlu1 %v3149_v10, %s3069_s22 }
  0x70   : > { %594 = vrot.lane.b32.xlu0 %v2773_v38, %s3067_s20 }
  0x73   : > { %1559 = vrot.lane.b32.xlu1 %v2742_v40, %s3073_s30 }
  0x74   : > { %1368 = vrot.lane.b32.xlu0 %v3152_v11, %s3072_s25 }
  0x77   : > { %981 = vrot.lane.b32.xlu1 %v2742_v40, %s3070_s23 }
  0x78   : > { %790 = vrot.lane.b32.xlu0 %v3152_v11, %s3069_s22  ;;  %v2746_v11 = vld [vmem:[%s3120_s19 + $0x91] sm:$0xff] }
  0x7b   : > { %1752 = vrot.lane.b32.xlu1 %v2774_v42, %s3074_s8 }
  0x7c   : > { %1561 = vrot.lane.b32.xlu0 %v2743_v43, %s3073_s30 }
  0x7f   : > { %983 = vrot.lane.b32.xlu1 %v2743_v43, %s3070_s23 }
  0x80   : > { %403 = vrot.lane.b32.xlu0 %v2742_v40, %s3068_s21 }
  0x83   : > { %1754 = vrot.lane.b32.xlu1 %v2775_v44, %s3074_s8 }
  0x84   : > { %1174 = vrot.lane.b32.xlu0 %v2774_v42, %s3071_s24 }
  0x85   : > { %v581_v45 = vpop.permute.xlu1 %580 }
  0x86   : > { %v388_v46 = vpop.permute.xlu0 %387 }
  0x87   : > { %484 = vst.msk [vmem:[#allocation2] sm:$0xff] %vm483_vm2, %v388_v46  ;;  %596 = vrot.lane.b32.xlu1 %v2774_v42, %s3067_s20 }
  0x88   : > { %405 = vrot.lane.b32.xlu0 %v2743_v43, %s3068_s21  ;;  %677 = vst.msk [vmem:[#allocation2] sm:$0xff] %vm676_vm3, %v581_v45  ;;  %v2749_v45 = vld [vmem:[%s3120_s19 + $0xb1] sm:$0xff] }
  0x89   : > { %v583_v47 = vpop.permute.xlu1 %582 }
  0x8a   : > { %v390_v48 = vpop.permute.xlu0 %389 }
  0x8b   : > { %485 = vst.msk [vmem:[#allocation2 + $0x8] sm:$0xff] %vm483_vm2, %v390_v48  ;;  %1370 = vrot.lane.b32.xlu1 %v3166_v15, %s3072_s25 }
  0x8c   : > { %1176 = vrot.lane.b32.xlu0 %v2775_v44, %s3071_s24  ;;  %678 = vst.msk [vmem:[#allocation2 + $0x8] sm:$0xff] %vm676_vm3, %v583_v47 }
  0x8d   : > { %v779_v50 = vpop.permute.xlu1 %778 }
  0x8e   : > { %v777_v51 = vpop.permute.xlu0 %776  ;;  %874 = vst.msk [vmem:[#allocation2 + $0x8] sm:$0xff] %vm872_vm4, %v779_v50 }
  0x8f   : > { %873 = vst.msk [vmem:[#allocation2] sm:$0xff] %vm872_vm4, %v777_v51  ;;  %792 = vrot.lane.b32.xlu1 %v3166_v15, %s3069_s22 }
  0x90   : > { %598 = vrot.lane.b32.xlu0 %v2775_v44, %s3067_s20 }
  0x91   : > { %v392_v53 = vpop.permute.xlu1 %391 }
  0x92   : > { %v970_v54 = vpop.permute.xlu0 %969  ;;  %486 = vst.msk [vmem:[#allocation2 + $0x10] sm:$0xff] %vm483_vm2, %v392_v53 }
  0x93   : > { %1066 = vst.msk [vmem:[#allocation2] sm:$0xff] %vm1065_vm5, %v970_v54  ;;  %1563 = vrot.lane.b32.xlu1 %v2744_v52, %s3073_s30 }
  0x94   : > { %1372 = vrot.lane.b32.xlu0 %v3169_v16, %s3072_s25 }
  0x95   : > { %v1163_v56 = vpop.permute.xlu1 %1162 }
  0x96   : > { %v972_v57 = vpop.permute.xlu0 %971  ;;  %1259 = vst.msk [vmem:[#allocation2] sm:$0xff] %vm1258_vm6, %v1163_v56 }
  0x97   : > { %1067 = vst.msk [vmem:[#allocation2 + $0x8] sm:$0xff] %vm1065_vm5, %v972_v57  ;;  %985 = vrot.lane.b32.xlu1 %v2744_v52, %s3070_s23  ;;  %v3452_v57 = vld [vmem:[%s3120_s19 + $0x120] sm:$0xff] }
  0x98   : > { %794 = vrot.lane.b32.xlu0 %v3169_v16, %s3069_s22  ;;  %315 = vst.msk [vmem:[#allocation2 + $0xc0] sm:$0xff] %vm290_vm0, %v3452_v57 }
  0x99   : > { %v585_v60 = vpop.permute.xlu1 %584 }
  0x9a   : > { %v394_v61 = vpop.permute.xlu0 %393  ;;  %679 = vst.msk [vmem:[#allocation2 + $0x10] sm:$0xff] %vm676_vm3, %v585_v60 }
  0x9b   : > { %487 = vst.msk [vmem:[#allocation2 + $0x18] sm:$0xff] %vm483_vm2, %v394_v61  ;;  %1756 = vrot.lane.b32.xlu1 %v2776_v58, %s3074_s8 }
  0x9c   : > { %1565 = vrot.lane.b32.xlu0 %v2745_v59, %s3073_s30 }
  0x9d   : > { %v1359_v62 = vpop.permute.xlu1 %1358 }
  0x9e   : > { %v1165_v63 = vpop.permute.xlu0 %1164  ;;  %1455 = vst.msk [vmem:[#allocation2] sm:$0xff] %vm1454_vm7, %v1359_v62 }
  0x9f   : > { %1260 = vst.msk [vmem:[#allocation2 + $0x8] sm:$0xff] %vm1258_vm6, %v1165_v63  ;;  %987 = vrot.lane.b32.xlu1 %v2745_v59, %s3070_s23  ;;  %v2750_v63 = vld [vmem:[%s3120_s19 + $0xc1] sm:$0xff] }
  0xa0   : > { %407 = vrot.lane.b32.xlu0 %v2744_v52, %s3068_s21 }
  0xa1   : > { %v781_v1 = vpop.permute.xlu1 %780 }
  0xa2   : > { %v587_v2 = vpop.permute.xlu0 %586  ;;  %875 = vst.msk [vmem:[#allocation2 + $0x10] sm:$0xff] %vm872_vm4, %v781_v1 }
  0xa3   : > { %680 = vst.msk [vmem:[#allocation2 + $0x18] sm:$0xff] %vm676_vm3, %v587_v2  ;;  %1758 = vrot.lane.b32.xlu1 %v2777_v0, %s3074_s8 }
  0xa4   : > { %1178 = vrot.lane.b32.xlu0 %v2776_v58, %s3071_s24 }
  0xa5   : > { %v1552_v3 = vpop.permute.xlu1 %1551 }
  0xa6   : > { %v1361_v4 = vpop.permute.xlu0 %1360  ;;  %1648 = vst.msk [vmem:[#allocation2] sm:$0xff] %vm1647_vm8, %v1552_v3 }
  0xa7   : > { %1456 = vst.msk [vmem:[#allocation2 + $0x8] sm:$0xff] %vm1454_vm7, %v1361_v4  ;;  %600 = vrot.lane.b32.xlu1 %v2776_v58, %s3067_s20  ;;  %v3457_v58 = vld [vmem:[%s3120_s19 + $0x128] sm:$0xff] }
  0xa8   : > { %409 = vrot.lane.b32.xlu0 %v2745_v59, %s3068_s21  ;;  %316 = vst.msk [vmem:[#allocation2 + $0xc8] sm:$0xff] %vm290_vm0, %v3457_v58 }
  0xa9   : > { %v974_v7 = vpop.permute.xlu1 %973 }
  0xaa   : > { %v783_v8 = vpop.permute.xlu0 %782  ;;  %1068 = vst.msk [vmem:[#allocation2 + $0x10] sm:$0xff] %vm1065_vm5, %v974_v7  ;;  %v2751_v7 = vld [vmem:[%s3120_s19 + $0xc9] sm:$0xff] }
  0xab   : > { %876 = vst.msk [vmem:[#allocation2 + $0x18] sm:$0xff] %vm872_vm4, %v783_v8  ;;  %1374 = vrot.lane.b32.xlu1 %v3185_v20, %s3072_s25 }
  0xac   : > { %1180 = vrot.lane.b32.xlu0 %v2777_v0, %s3071_s24 }
  0xad   : > { %v1745_v9 = vpop.permute.xlu1 %1744 }
  0xae   : > { %v1554_v10 = vpop.permute.xlu0 %1553  ;;  %1841 = vst.msk [vmem:[#allocation2] sm:$0xff] %vm1840_vm9, %v1745_v9 }
  0xaf   : > { %1649 = vst.msk [vmem:[#allocation2 + $0x8] sm:$0xff] %vm1647_vm8, %v1554_v10  ;;  %796 = vrot.lane.b32.xlu1 %v3185_v20, %s3069_s22 }
  0xb0   : > { %602 = vrot.lane.b32.xlu0 %v2777_v0, %s3067_s20 }
  0xb1   : > { %v976_v12 = vpop.permute.xlu1 %975 }
  0xb2   : > { %v396_v13 = vpop.permute.xlu0 %395  ;;  %1069 = vst.msk [vmem:[#allocation2 + $0x18] sm:$0xff] %vm1065_vm5, %v976_v12 }
  0xb3   : > { %488 = vst.msk [vmem:[#allocation2 + $0x20] sm:$0xff] %vm483_vm2, %v396_v13  ;;  %1567 = vrot.lane.b32.xlu1 %v2746_v11, %s3073_s30 }
  0xb4   : > { %1376 = vrot.lane.b32.xlu0 %v3201_v24, %s3072_s25 }
  0xb5   : > { %v1747_v14 = vpop.permute.xlu1 %1746  ;;  %v1873_v16 = vld [vmem:[#allocation2] sm:$0xff] }
  0xb6   : > { %v1167_v15 = vpop.permute.xlu0 %1166  ;;  %1842 = vst.msk [vmem:[#allocation2 + $0x8] sm:$0xff] %vm1840_vm9, %v1747_v14  ;;  %2921 = vmatprep.mubr.msk.f32.mxu0 %vm1910_vm10, %v1873_v16 }
  0xb7   : > { %1261 = vst.msk [vmem:[#allocation2 + $0x10] sm:$0xff] %vm1258_vm6, %v1167_v15  ;;  %989 = vrot.lane.b32.xlu1 %v2746_v11, %s3070_s23 }
  0xb8   : > { %798 = vrot.lane.b32.xlu0 %v3201_v24, %s3069_s22  ;;  %v2779_v24 = vld [vmem:[%s3120_s19 + $0x9a] sm:$0xff] }
  0xb9   : > { %v589_v19 = vpop.permute.xlu1 %588 }
  0xba   : > { %v398_v20 = vpop.permute.xlu0 %397  ;;  %681 = vst.msk [vmem:[#allocation2 + $0x20] sm:$0xff] %vm676_vm3, %v589_v19 }
  0xbb   : > { %489 = vst.msk [vmem:[#allocation2 + $0x28] sm:$0xff] %vm483_vm2, %v398_v20  ;;  %1760 = vrot.lane.b32.xlu1 %v2778_v17, %s3074_s8 }
  0xbc   : > { %1569 = vrot.lane.b32.xlu0 %v2747_v18, %s3073_s30 }
  0xbd   : > { %v1363_v21 = vpop.permute.xlu1 %1362  ;;  %v1874_v23 = vld [vmem:[#allocation2 + $0x8] sm:$0xff] }
  0xbe   : > { %v1169_v22 = vpop.permute.xlu0 %1168  ;;  %1457 = vst.msk [vmem:[#allocation2 + $0x10] sm:$0xff] %vm1454_vm7, %v1363_v21  ;;  %2922 = vmatmul.mubr.msk.f32.vlgmr.msra.gmra.mrb[0].mxu0 %vm1910_vm10, %v1874_v23  ;;  %v2752_v23 = vld [vmem:[%s3120_s19 + $0xd9] sm:$0xff] }
  0xbf   : > { %1262 = vst.msk [vmem:[#allocation2 + $0x18] sm:$0xff] %vm1258_vm6, %v1169_v22  ;;  %991 = vrot.lane.b32.xlu1 %v2747_v18, %s3070_s23 }
  0xc0   : > { %411 = vrot.lane.b32.xlu0 %v2746_v11, %s3068_s21 }
  0xc1   : > { %v785_v25 = vpop.permute.xlu1 %784 }
  0xc2   : > { %v591_v26 = vpop.permute.xlu0 %590  ;;  %877 = vst.msk [vmem:[#allocation2 + $0x20] sm:$0xff] %vm872_vm4, %v785_v25 }
  0xc3   : > { %682 = vst.msk [vmem:[#allocation2 + $0x28] sm:$0xff] %vm676_vm3, %v591_v26  ;;  %1762 = vrot.lane.b32.xlu1 %v2779_v24, %s3074_s8 }
  0xc4   : > { %1182 = vrot.lane.b32.xlu0 %v2778_v17, %s3071_s24 }
  0xc5   : > { %v1556_v27 = vpop.permute.xlu1 %1555 }
  0xc6   : > { %v1365_v28 = vpop.permute.xlu0 %1364  ;;  %1650 = vst.msk [vmem:[#allocation2 + $0x10] sm:$0xff] %vm1647_vm8, %v1556_v27 }
  0xc7   : > { %1458 = vst.msk [vmem:[#allocation2 + $0x18] sm:$0xff] %vm1454_vm7, %v1365_v28  ;;  %604 = vrot.lane.b32.xlu1 %v2778_v17, %s3067_s20  ;;  %v3504_v17 = vld [vmem:[%s3120_s19 + $0x138] sm:$0xff] }
  0xc8   : > { %413 = vrot.lane.b32.xlu0 %v2747_v18, %s3068_s21  ;;  %v3509_v18 = vld [vmem:[%s3120_s19 + $0x140] sm:$0xff]  ;;  %317 = vst.msk [vmem:[#allocation2 + $0xd0] sm:$0xff] %vm290_vm0, %v3504_v17 }
  0xc9   : > { %v978_v31 = vpop.permute.xlu1 %977  ;;  %318 = vst.msk [vmem:[#allocation2 + $0xd8] sm:$0xff] %vm290_vm0, %v3509_v18 }
  0xca   : > { %v787_v32 = vpop.permute.xlu0 %786  ;;  %1070 = vst.msk [vmem:[#allocation2 + $0x20] sm:$0xff] %vm1065_vm5, %v978_v31  ;;  %v2784_v31 = vld [vmem:[%s3120_s19 + $0xda] sm:$0xff] }
  0xcb   : > { %878 = vst.msk [vmem:[#allocation2 + $0x28] sm:$0xff] %vm872_vm4, %v787_v32  ;;  %1378 = vrot.lane.b32.xlu1 %v3230_v33, %s3072_s25 }
  0xcc   : > { %1184 = vrot.lane.b32.xlu0 %v2779_v24, %s3071_s24 }
  0xcd   : > { %v1749_v34 = vpop.permute.xlu1 %1748 }
  0xce   : > { %v1558_v36 = vpop.permute.xlu0 %1557  ;;  %1843 = vst.msk [vmem:[#allocation2 + $0x10] sm:$0xff] %vm1840_vm9, %v1749_v34 }
  0xcf   : > { %1651 = vst.msk [vmem:[#allocation2 + $0x18] sm:$0xff] %vm1647_vm8, %v1558_v36  ;;  %800 = vrot.lane.b32.xlu1 %v3230_v33, %s3069_s22  ;;  %v2780_v33 = vld [vmem:[%s3120_s19 + $0xaa] sm:$0xff] }
  0xd0   : > { %606 = vrot.lane.b32.xlu0 %v2779_v24, %s3067_s20 }
  0xd1   : > { %v980_v38 = vpop.permute.xlu1 %979 }
  0xd2   : > { %v400_v40 = vpop.permute.xlu0 %399  ;;  %1071 = vst.msk [vmem:[#allocation2 + $0x28] sm:$0xff] %vm1065_vm5, %v980_v38 }
  0xd3   : > { %490 = vst.msk [vmem:[#allocation2 + $0x30] sm:$0xff] %vm483_vm2, %v400_v40  ;;  %1571 = vrot.lane.b32.xlu1 %v2748_v37, %s3073_s30 }
  0xd4   : > { %1380 = vrot.lane.b32.xlu0 %v3242_v35, %s3072_s25 }
  0xd5   : > { %v1751_v42 = vpop.permute.xlu1 %1750  ;;  %v1875_v44 = vld [vmem:[#allocation2 + $0x10] sm:$0xff] }
  0xd6   : > { %v1171_v43 = vpop.permute.xlu0 %1170  ;;  %1844 = vst.msk [vmem:[#allocation2 + $0x18] sm:$0xff] %vm1840_vm9, %v1751_v42  ;;  %2924 = vmatprep.mubr.msk.f32.mxu0 %vm1910_vm10, %v1875_v44 }
  0xd7   : > { %1263 = vst.msk [vmem:[#allocation2 + $0x20] sm:$0xff] %vm1258_vm6, %v1171_v43  ;;  %993 = vrot.lane.b32.xlu1 %v2748_v37, %s3070_s23 }
  0xd8   : > { %802 = vrot.lane.b32.xlu0 %v3242_v35, %s3069_s22  ;;  %v2781_v35 = vld [vmem:[%s3120_s19 + $0xb2] sm:$0xff] }
  0xd9   : > { %v593_v46 = vpop.permute.xlu1 %592 }
  0xda   : > { %v402_v47 = vpop.permute.xlu0 %401  ;;  %683 = vst.msk [vmem:[#allocation2 + $0x30] sm:$0xff] %vm676_vm3, %v593_v46  ;;  %v3568_v46 = vld [vmem:[%s3120_s19 + $0xf1] sm:$0xff] }
  0xdb   : > { %491 = vst.msk [vmem:[#allocation2 + $0x38] sm:$0xff] %vm483_vm2, %v402_v47  ;;  %1764 = vrot.lane.b32.xlu1 %v2780_v33, %s3074_s8  ;;  %v3571_v47 = vld [vmem:[%s3120_s19 + $0xf9] sm:$0xff] }
  0xdc   : > { %1573 = vrot.lane.b32.xlu0 %v2749_v45, %s3073_s30 }
  0xdd   : > { %v1367_v48 = vpop.permute.xlu1 %1366  ;;  %v1876_v51 = vld [vmem:[#allocation2 + $0x18] sm:$0xff] }
  0xde   : > { %v1173_v50 = vpop.permute.xlu0 %1172  ;;  %1459 = vst.msk [vmem:[#allocation2 + $0x20] sm:$0xff] %vm1454_vm7, %v1367_v48  ;;  %2925 = vmatmul.mubr.msk.f32.gmra.mrb[2].mxu0 %vm1910_vm10, %v1876_v51  ;;  %v3582_v51 = vld [vmem:[%s3120_s19 + $0xf2] sm:$0xff] }
  0xdf   : > { %1264 = vst.msk [vmem:[#allocation2 + $0x28] sm:$0xff] %vm1258_vm6, %v1173_v50  ;;  %995 = vrot.lane.b32.xlu1 %v2749_v45, %s3070_s23 }
  0xe0   : > { %415 = vrot.lane.b32.xlu0 %v2748_v37, %s3068_s21 }
  0xe1   : > { %v789_v52 = vpop.permute.xlu1 %788 }
  0xe2   : > { %v595_v53 = vpop.permute.xlu0 %594  ;;  %879 = vst.msk [vmem:[#allocation2 + $0x30] sm:$0xff] %vm872_vm4, %v789_v52 }
  0xe3   : > { %684 = vst.msk [vmem:[#allocation2 + $0x38] sm:$0xff] %vm676_vm3, %v595_v53  ;;  %1766 = vrot.lane.b32.xlu1 %v2781_v35, %s3074_s8  ;;  %v3590_v53 = vld [vmem:[%s3120_s19 + $0xfa] sm:$0xff] }
  0xe4   : > { %1186 = vrot.lane.b32.xlu0 %v2780_v33, %s3071_s24 }
  0xe5   : > { %v1560_v54 = vpop.permute.xlu1 %1559 }
  0xe6   : > { %v1369_v56 = vpop.permute.xlu0 %1368  ;;  %1652 = vst.msk [vmem:[#allocation2 + $0x20] sm:$0xff] %vm1647_vm8, %v1560_v54 }
  0xe7   : > { %1460 = vst.msk [vmem:[#allocation2 + $0x28] sm:$0xff] %vm1454_vm7, %v1369_v56  ;;  %608 = vrot.lane.b32.xlu1 %v2780_v33, %s3067_s20  ;;  %v3556_v33 = vld [vmem:[%s3120_s19 + $0x150] sm:$0xff] }
  0xe8   : > { %417 = vrot.lane.b32.xlu0 %v2749_v45, %s3068_s21  ;;  %v3563_v45 = vld [vmem:[%s3120_s19 + $0x158] sm:$0xff]  ;;  %319 = vst.msk [vmem:[#allocation2 + $0xe0] sm:$0xff] %vm290_vm0, %v3556_v33 }
  0xe9   : > { %v982_v59 = vpop.permute.xlu1 %981  ;;  %320 = vst.msk [vmem:[#allocation2 + $0xe8] sm:$0xff] %vm290_vm0, %v3563_v45 }
  0xea   : > { %v791_v60 = vpop.permute.xlu0 %790  ;;  %1072 = vst.msk [vmem:[#allocation2 + $0x30] sm:$0xff] %vm1065_vm5, %v982_v59 }
  0xeb   : > { %880 = vst.msk [vmem:[#allocation2 + $0x38] sm:$0xff] %vm872_vm4, %v791_v60  ;;  %1382 = vrot.lane.b32.xlu1 %v3264_v39, %s3072_s25 }
  0xec   : > { %1188 = vrot.lane.b32.xlu0 %v2781_v35, %s3071_s24 }
  0xed   : > { %v1753_v61 = vpop.permute.xlu1 %1752 }
  0xee   : > { %v1562_v62 = vpop.permute.xlu0 %1561  ;;  %1845 = vst.msk [vmem:[#allocation2 + $0x20] sm:$0xff] %vm1840_vm9, %v1753_v61 }
  0xef   : > { %1653 = vst.msk [vmem:[#allocation2 + $0x28] sm:$0xff] %vm1647_vm8, %v1562_v62  ;;  %804 = vrot.lane.b32.xlu1 %v3264_v39, %s3069_s22  ;;  %v2782_v39 = vld [vmem:[%s3120_s19 + $0xc2] sm:$0xff] }
  0xf0   : > { %610 = vrot.lane.b32.xlu0 %v2781_v35, %s3067_s20 }
  0xf1   : > { %v984_v0 = vpop.permute.xlu1 %983 }
  0xf2   : > { %v404_v1 = vpop.permute.xlu0 %403  ;;  %1073 = vst.msk [vmem:[#allocation2 + $0x38] sm:$0xff] %vm1065_vm5, %v984_v0 }
  0xf3   : > { %492 = vst.msk [vmem:[#allocation2 + $0x40] sm:$0xff] %vm483_vm2, %v404_v1  ;;  %1575 = vrot.lane.b32.xlu1 %v2750_v63, %s3073_s30 }
  0xf4   : > { %1384 = vrot.lane.b32.xlu0 %v3276_v41, %s3072_s25 }
  0xf5   : > { %v1755_v2 = vpop.permute.xlu1 %1754  ;;  %v1877_v4 = vld [vmem:[#allocation2 + $0x20] sm:$0xff] }
  0xf6   : > { %v1175_v3 = vpop.permute.xlu0 %1174  ;;  %1846 = vst.msk [vmem:[#allocation2 + $0x28] sm:$0xff] %vm1840_vm9, %v1755_v2  ;;  %2927 = vmatprep.mubr.msk.f32.mxu0 %vm1910_vm10, %v1877_v4 }
  0xf7   : > { %1265 = vst.msk [vmem:[#allocation2 + $0x30] sm:$0xff] %vm1258_vm6, %v1175_v3  ;;  %997 = vrot.lane.b32.xlu1 %v2750_v63, %s3070_s23 }
  0xf8   : > { %806 = vrot.lane.b32.xlu0 %v3276_v41, %s3069_s22  ;;  %v2783_v41 = vld [vmem:[%s3120_s19 + $0xca] sm:$0xff] }
  0xf9   : > { %v597_v8 = vpop.permute.xlu1 %596 }
  0xfa   : > { %v406_v9 = vpop.permute.xlu0 %405  ;;  %685 = vst.msk [vmem:[#allocation2 + $0x40] sm:$0xff] %vm676_vm3, %v597_v8  ;;  %v3636_v8 = vld [vmem:[%s3120_s19 + $0x109] sm:$0xff] }
  0xfb   : > { %493 = vst.msk [vmem:[#allocation2 + $0x48] sm:$0xff] %vm483_vm2, %v406_v9  ;;  %1768 = vrot.lane.b32.xlu1 %v2782_v39, %s3074_s8  ;;  %v3639_v9 = vld [vmem:[%s3120_s19 + $0x111] sm:$0xff] }
  0xfc   : > { %1577 = vrot.lane.b32.xlu0 %v2751_v7, %s3073_s30 }
  0xfd   : > { %v1371_v10 = vpop.permute.xlu1 %1370  ;;  %v1878_v12 = vld [vmem:[#allocation2 + $0x28] sm:$0xff] }
  0xfe   : > { %v1177_v11 = vpop.permute.xlu0 %1176  ;;  %1461 = vst.msk [vmem:[#allocation2 + $0x30] sm:$0xff] %vm1454_vm7, %v1371_v10  ;;  %2928 = vmatmul.mubr.msk.f32.gmra.mrb[4].mxu0 %vm1910_vm10, %v1878_v12  ;;  %v3650_v12 = vld [vmem:[%s3120_s19 + $0x10a] sm:$0xff] }
  0xff   : > { %1266 = vst.msk [vmem:[#allocation2 + $0x38] sm:$0xff] %vm1258_vm6, %v1177_v11  ;;  %999 = vrot.lane.b32.xlu1 %v2751_v7, %s3070_s23 }
 0x100   : > { %419 = vrot.lane.b32.xlu0 %v2750_v63, %s3068_s21 }
 0x101   : > { %v793_v13 = vpop.permute.xlu1 %792 }
 0x102   : > { %v599_v14 = vpop.permute.xlu0 %598  ;;  %881 = vst.msk [vmem:[#allocation2 + $0x40] sm:$0xff] %vm872_vm4, %v793_v13 }
 0x103   : > { %686 = vst.msk [vmem:[#allocation2 + $0x48] sm:$0xff] %vm676_vm3, %v599_v14  ;;  %1770 = vrot.lane.b32.xlu1 %v2783_v41, %s3074_s8  ;;  %v3659_v14 = vld [vmem:[%s3120_s19 + $0x112] sm:$0xff] }
 0x104   : > { %1190 = vrot.lane.b32.xlu0 %v2782_v39, %s3071_s24 }
 0x105   : > { %v1564_v15 = vpop.permute.xlu1 %1563 }
 0x106   : > { %v1373_v16 = vpop.permute.xlu0 %1372  ;;  %1654 = vst.msk [vmem:[#allocation2 + $0x30] sm:$0xff] %vm1647_vm8, %v1564_v15 }
 0x107   : > { %1462 = vst.msk [vmem:[#allocation2 + $0x38] sm:$0xff] %vm1454_vm7, %v1373_v16  ;;  %612 = vrot.lane.b32.xlu1 %v2782_v39, %s3067_s20  ;;  %v3624_v39 = vld [vmem:[%s3120_s19 + $0x168] sm:$0xff] }
 0x108   : > { %421 = vrot.lane.b32.xlu0 %v2751_v7, %s3068_s21  ;;  %v3631_v7 = vld [vmem:[%s3120_s19 + $0x170] sm:$0xff]  ;;  %321 = vst.msk [vmem:[#allocation2 + $0xf0] sm:$0xff] %vm290_vm0, %v3624_v39 }
 0x109   : > { %v986_v19 = vpop.permute.xlu1 %985  ;;  %322 = vst.msk [vmem:[#allocation2 + $0xf8] sm:$0xff] %vm290_vm0, %v3631_v7 }
 0x10a   : > { %v795_v20 = vpop.permute.xlu0 %794  ;;  %1074 = vst.msk [vmem:[#allocation2 + $0x40] sm:$0xff] %vm1065_vm5, %v986_v19 }
 0x10b   : > { %882 = vst.msk [vmem:[#allocation2 + $0x48] sm:$0xff] %vm872_vm4, %v795_v20  ;;  %1386 = vrot.lane.b32.xlu1 %v3305_v49, %s3072_s25 }
 0x10c   : > { %1192 = vrot.lane.b32.xlu0 %v2783_v41, %s3071_s24 }
 0x10d   : > { %v1757_v21 = vpop.permute.xlu1 %1756 }
 0x10e   : > { %v1566_v22 = vpop.permute.xlu0 %1565  ;;  %1847 = vst.msk [vmem:[#allocation2 + $0x30] sm:$0xff] %vm1840_vm9, %v1757_v21 }
 0x10f   : > { %1655 = vst.msk [vmem:[#allocation2 + $0x38] sm:$0xff] %vm1647_vm8, %v1566_v22  ;;  %808 = vrot.lane.b32.xlu1 %v3305_v49, %s3069_s22  ;;  %v2753_v49 = vld [vmem:[%s3120_s19 + $0xe1] sm:$0xff] }
 0x110   : > { %614 = vrot.lane.b32.xlu0 %v2783_v41, %s3067_s20 }
 0x111   : > { %v988_v24 = vpop.permute.xlu1 %987 }
 0x112   : > { %v408_v25 = vpop.permute.xlu0 %407  ;;  %1075 = vst.msk [vmem:[#allocation2 + $0x48] sm:$0xff] %vm1065_vm5, %v988_v24 }
 0x113   : > { %494 = vst.msk [vmem:[#allocation2 + $0x50] sm:$0xff] %vm483_vm2, %v408_v25  ;;  %1579 = vrot.lane.b32.xlu1 %v2752_v23, %s3073_s30 }
 0x114   : > { %1388 = vrot.lane.b32.xlu0 %v3318_v55, %s3072_s25 }
 0x115   : > { %v1759_v26 = vpop.permute.xlu1 %1758  ;;  %v1879_v28 = vld [vmem:[#allocation2 + $0x30] sm:$0xff] }
 0x116   : > { %v1179_v27 = vpop.permute.xlu0 %1178  ;;  %1848 = vst.msk [vmem:[#allocation2 + $0x38] sm:$0xff] %vm1840_vm9, %v1759_v26  ;;  %2930 = vmatprep.mubr.msk.f32.mxu0 %vm1910_vm10, %v1879_v28 }
 0x117   : > { %1267 = vst.msk [vmem:[#allocation2 + $0x40] sm:$0xff] %vm1258_vm6, %v1179_v27  ;;  %1001 = vrot.lane.b32.xlu1 %v2752_v23, %s3070_s23 }
 0x118   : > { %810 = vrot.lane.b32.xlu0 %v3318_v55, %s3069_s22  ;;  %v2785_v55 = vld [vmem:[%s3120_s19 + $0xe2] sm:$0xff] }
 0x119   : > { %v601_v32 = vpop.permute.xlu1 %600 }
 0x11a   : > { %v410_v34 = vpop.permute.xlu0 %409  ;;  %687 = vst.msk [vmem:[#allocation2 + $0x50] sm:$0xff] %vm676_vm3, %v601_v32 }
 0x11b   : > { %495 = vst.msk [vmem:[#allocation2 + $0x58] sm:$0xff] %vm483_vm2, %v410_v34  ;;  %1772 = vrot.lane.b32.xlu1 %v2784_v31, %s3074_s8 }
 0x11c   : > { %1581 = vrot.lane.b32.xlu0 %v2753_v49, %s3073_s30 }
 0x11d   : > { %v1375_v36 = vpop.permute.xlu1 %1374  ;;  %v1880_v38 = vld [vmem:[#allocation2 + $0x38] sm:$0xff] }
 0x11e   : > { %v1181_v37 = vpop.permute.xlu0 %1180  ;;  %1463 = vst.msk [vmem:[#allocation2 + $0x40] sm:$0xff] %vm1454_vm7, %v1375_v36  ;;  %2931 = vmatmul.mubr.msk.f32.gmra.mrb[6].mxu0 %vm1910_vm10, %v1880_v38  ;;  %v3712_v36 = vld [vmem:[%s3120_s19 + $0x122] sm:$0xff] }
 0x11f   : > { %1268 = vst.msk [vmem:[#allocation2 + $0x48] sm:$0xff] %vm1258_vm6, %v1181_v37  ;;  %1194 = vrot.lane.b32.xlu1 %v2784_v31, %s3071_s24 }
 0x120   : > { %1003 = vrot.lane.b32.xlu0 %v2753_v49, %s3070_s23 }
 0x121   : > { %v797_v40 = vpop.permute.xlu1 %796 }
 0x122   : > { %v603_v42 = vpop.permute.xlu0 %602  ;;  %883 = vst.msk [vmem:[#allocation2 + $0x50] sm:$0xff] %vm872_vm4, %v797_v40 }
 0x123   : > { %688 = vst.msk [vmem:[#allocation2 + $0x58] sm:$0xff] %vm676_vm3, %v603_v42  ;;  %1196 = vrot.lane.b32.xlu1 %v2785_v55, %s3071_s24 }
 0x124   : > { %1774 = vrot.lane.b32.xlu0 %v2785_v55, %s3074_s8 }
 0x125   : > { %v1568_v43 = vpop.permute.xlu1 %1567 }
 0x126   : > { %v1377_v44 = vpop.permute.xlu0 %1376  ;;  %1656 = vst.msk [vmem:[#allocation2 + $0x40] sm:$0xff] %vm1647_vm8, %v1568_v43 }
 0x127   : > { %1464 = vst.msk [vmem:[#allocation2 + $0x48] sm:$0xff] %vm1454_vm7, %v1377_v44  ;;  %1392 = vrot.lane.b32.xlu1 %v3353_v6, %s3072_s25 }
 0x128   : > { %1390 = vrot.lane.b32.xlu0 %v3348_v5, %s3072_s25 }
 0x129   : > { %v990_v48 = vpop.permute.xlu1 %989 }
 0x12a   : > { %v799_v50 = vpop.permute.xlu0 %798  ;;  %1076 = vst.msk [vmem:[#allocation2 + $0x50] sm:$0xff] %vm1065_vm5, %v990_v48 }
 0x12b   : > { %884 = vst.msk [vmem:[#allocation2 + $0x58] sm:$0xff] %vm872_vm4, %v799_v50  ;;  %1585 = vrot.lane.b32.xlu1 %v3571_v47, %s3073_s30 }
 0x12c   : > { %1583 = vrot.lane.b32.xlu0 %v3568_v46, %s3073_s30 }
 0x12d   : > { %v1761_v35 = vpop.permute.xlu1 %1760 }
 0x12e   : > { %v1570_v52 = vpop.permute.xlu0 %1569  ;;  %1849 = vst.msk [vmem:[#allocation2 + $0x40] sm:$0xff] %vm1840_vm9, %v1761_v35 }
 0x12f   : > { %1657 = vst.msk [vmem:[#allocation2 + $0x48] sm:$0xff] %vm1647_vm8, %v1570_v52  ;;  %423 = vrot.lane.b32.xlu1 %v2752_v23, %s3068_s21 }
 0x130   : > { %1776 = vrot.lane.b32.xlu0 %v3582_v51, %s3074_s8 }
 0x131   : > { %v992_v54 = vpop.permute.xlu1 %991 }
 0x132   : > { %v412_v56 = vpop.permute.xlu0 %411  ;;  %1077 = vst.msk [vmem:[#allocation2 + $0x58] sm:$0xff] %vm1065_vm5, %v992_v54  ;;  %v3762_v54 = vld [vmem:[%s3120_s19 + $0x139] sm:$0xff] }
 0x133   : > { %496 = vst.msk [vmem:[#allocation2 + $0x60] sm:$0xff] %vm483_vm2, %v412_v56  ;;  %425 = vrot.lane.b32.xlu1 %v2753_v49, %s3068_s21  ;;  %v3700_v49 = vld [vmem:[%s3120_s19 + $0x121] sm:$0xff] }
 0x134   : > { %1778 = vrot.lane.b32.xlu0 %v3590_v53, %s3074_s8  ;;  %v3765_v56 = vld [vmem:[%s3120_s19 + $0x141] sm:$0xff] }
 0x135   : > { %v1763_v59 = vpop.permute.xlu1 %1762  ;;  %v1881_v61 = vld [vmem:[#allocation2 + $0x40] sm:$0xff] }
 0x136   : > { %v1183_v60 = vpop.permute.xlu0 %1182  ;;  %1850 = vst.msk [vmem:[#allocation2 + $0x48] sm:$0xff] %vm1840_vm9, %v1763_v59  ;;  %2933 = vmatprep.mubr.msk.f32.mxu0 %vm1910_vm10, %v1881_v61  ;;  %v3774_v61 = vld [vmem:[%s3120_s19 + $0x13a] sm:$0xff] }
 0x137   : > { %1269 = vst.msk [vmem:[#allocation2 + $0x50] sm:$0xff] %vm1258_vm6, %v1183_v60  ;;  %618 = vrot.lane.b32.xlu1 %v2785_v55, %s3067_s20  ;;  %v3721_v55 = vld [vmem:[%s3120_s19 + $0x12a] sm:$0xff] }
 0x138   : > { %616 = vrot.lane.b32.xlu0 %v2784_v31, %s3067_s20  ;;  %v3703_v31 = vld [vmem:[%s3120_s19 + $0x129] sm:$0xff] }
 0x139   : > { %v605_v62 = vpop.permute.xlu1 %604 }
 0x13a   : > { %v414_v63 = vpop.permute.xlu0 %413  ;;  %689 = vst.msk [vmem:[#allocation2 + $0x60] sm:$0xff] %vm676_vm3, %v605_v62 }
 0x13b   : > { %497 = vst.msk [vmem:[#allocation2 + $0x68] sm:$0xff] %vm483_vm2, %v414_v63  ;;  %814 = vrot.lane.b32.xlu1 %v3353_v6, %s3069_s22 }
 0x13c   : > { %812 = vrot.lane.b32.xlu0 %v3348_v5, %s3069_s22 }
 0x13d   : > { %v1379_v0 = vpop.permute.xlu1 %1378  ;;  %v1882_v2 = vld [vmem:[#allocation2 + $0x48] sm:$0xff] }
 0x13e   : > { %v1185_v1 = vpop.permute.xlu0 %1184  ;;  %1465 = vst.msk [vmem:[#allocation2 + $0x50] sm:$0xff] %vm1454_vm7, %v1379_v0  ;;  %2934 = vmatmul.mubr.msk.f32.gmra.mrb[8].mxu0 %vm1910_vm10, %v1882_v2  ;;  %v3783_v0 = vld [vmem:[%s3120_s19 + $0x142] sm:$0xff] }
 0x13f   : > { %1270 = vst.msk [vmem:[#allocation2 + $0x58] sm:$0xff] %vm1258_vm6, %v1185_v1  ;;  %1007 = vrot.lane.b32.xlu1 %v3571_v47, %s3070_s23 }
 0x140   : > { %1005 = vrot.lane.b32.xlu0 %v3568_v46, %s3070_s23 }
 0x141   : > { %v801_v5 = vpop.permute.xlu1 %800 }
 0x142   : > { %v607_v6 = vpop.permute.xlu0 %606  ;;  %885 = vst.msk [vmem:[#allocation2 + $0x60] sm:$0xff] %vm872_vm4, %v801_v5 }
 0x143   : > { %690 = vst.msk [vmem:[#allocation2 + $0x68] sm:$0xff] %vm676_vm3, %v607_v6  ;;  %1200 = vrot.lane.b32.xlu1 %v3590_v53, %s3071_s24 }
 0x144   : > { %1198 = vrot.lane.b32.xlu0 %v3582_v51, %s3071_s24 }
 0x145   : > { %v1572_v3 = vpop.permute.xlu1 %1571 }
 0x146   : > { %v1381_v4 = vpop.permute.xlu0 %1380  ;;  %1658 = vst.msk [vmem:[#allocation2 + $0x50] sm:$0xff] %vm1647_vm8, %v1572_v3 }
 0x147   : > { %1466 = vst.msk [vmem:[#allocation2 + $0x58] sm:$0xff] %vm1454_vm7, %v1381_v4  ;;  %1396 = vrot.lane.b32.xlu1 %v3405_v30, %s3072_s25 }
 0x148   : > { %1394 = vrot.lane.b32.xlu0 %v3400_v29, %s3072_s25 }
 0x149   : > { %v994_v10 = vpop.permute.xlu1 %993 }
 0x14a   : > { %v803_v11 = vpop.permute.xlu0 %802  ;;  %1078 = vst.msk [vmem:[#allocation2 + $0x60] sm:$0xff] %vm1065_vm5, %v994_v10 }
 0x14b   : > { %886 = vst.msk [vmem:[#allocation2 + $0x68] sm:$0xff] %vm872_vm4, %v803_v11  ;;  %1589 = vrot.lane.b32.xlu1 %v3639_v9, %s3073_s30 }
 0x14c   : > { %1587 = vrot.lane.b32.xlu0 %v3636_v8, %s3073_s30 }
 0x14d   : > { %v1765_v41 = vpop.permute.xlu1 %1764 }
 0x14e   : > { %v1574_v13 = vpop.permute.xlu0 %1573  ;;  %1851 = vst.msk [vmem:[#allocation2 + $0x50] sm:$0xff] %vm1840_vm9, %v1765_v41 }
 0x14f   : > { %1659 = vst.msk [vmem:[#allocation2 + $0x58] sm:$0xff] %vm1647_vm8, %v1574_v13  ;;  %427 = vrot.lane.b32.xlu1 %v3568_v46, %s3068_s21 }
 0x150   : > { %1780 = vrot.lane.b32.xlu0 %v3650_v12, %s3074_s8 }
 0x151   : > { %v996_v15 = vpop.permute.xlu1 %995 }
 0x152   : > { %v416_v16 = vpop.permute.xlu0 %415  ;;  %1079 = vst.msk [vmem:[#allocation2 + $0x68] sm:$0xff] %vm1065_vm5, %v996_v15 }
 0x153   : > { %498 = vst.msk [vmem:[#allocation2 + $0x70] sm:$0xff] %vm483_vm2, %v416_v16  ;;  %429 = vrot.lane.b32.xlu1 %v3571_v47, %s3068_s21 }
 0x154   : > { %1782 = vrot.lane.b32.xlu0 %v3659_v14, %s3074_s8 }
 0x155   : > { %v1767_v19 = vpop.permute.xlu1 %1766  ;;  %v1883_v21 = vld [vmem:[#allocation2 + $0x50] sm:$0xff] }
 0x156   : > { %v1187_v20 = vpop.permute.xlu0 %1186  ;;  %1852 = vst.msk [vmem:[#allocation2 + $0x58] sm:$0xff] %vm1840_vm9, %v1767_v19  ;;  %2936 = vmatprep.mubr.msk.f32.mxu0 %vm1910_vm10, %v1883_v21 }
 0x157   : > { %1271 = vst.msk [vmem:[#allocation2 + $0x60] sm:$0xff] %vm1258_vm6, %v1187_v20  ;;  %622 = vrot.lane.b32.xlu1 %v3590_v53, %s3067_s20 }
 0x158   : > { %620 = vrot.lane.b32.xlu0 %v3582_v51, %s3067_s20 }
 0x159   : > { %v609_v22 = vpop.permute.xlu1 %608 }
 0x15a   : > { %v418_v23 = vpop.permute.xlu0 %417  ;;  %691 = vst.msk [vmem:[#allocation2 + $0x70] sm:$0xff] %vm676_vm3, %v609_v22  ;;  %v3840_v22 = vld [vmem:[%s3120_s19 + $0x151] sm:$0xff] }
 0x15b   : > { %499 = vst.msk [vmem:[#allocation2 + $0x78] sm:$0xff] %vm483_vm2, %v418_v23  ;;  %818 = vrot.lane.b32.xlu1 %v3405_v30, %s3069_s22  ;;  %v3843_v23 = vld [vmem:[%s3120_s19 + $0x159] sm:$0xff] }
 0x15c   : > { %816 = vrot.lane.b32.xlu0 %v3400_v29, %s3069_s22 }
 0x15d   : > { %v1383_v24 = vpop.permute.xlu1 %1382  ;;  %v1884_v26 = vld [vmem:[#allocation2 + $0x58] sm:$0xff] }
 0x15e   : > { %v1189_v25 = vpop.permute.xlu0 %1188  ;;  %1467 = vst.msk [vmem:[#allocation2 + $0x60] sm:$0xff] %vm1454_vm7, %v1383_v24  ;;  %2937 = vmatmul.mubr.msk.f32.gmra.mrb[10].mxu0 %vm1910_vm10, %v1884_v26 }
 0x15f   : > { %1272 = vst.msk [vmem:[#allocation2 + $0x68] sm:$0xff] %vm1258_vm6, %v1189_v25  ;;  %1011 = vrot.lane.b32.xlu1 %v3639_v9, %s3070_s23 }
 0x160   : > { %1009 = vrot.lane.b32.xlu0 %v3636_v8, %s3070_s23 }
 0x161   : > { %v805_v29 = vpop.permute.xlu1 %804 }
 0x162   : > { %v611_v27 = vpop.permute.xlu0 %610  ;;  %887 = vst.msk [vmem:[#allocation2 + $0x70] sm:$0xff] %vm872_vm4, %v805_v29  ;;  %v3853_v29 = vld [vmem:[%s3120_s19 + $0x152] sm:$0xff] }
 0x163   : > { %692 = vst.msk [vmem:[#allocation2 + $0x78] sm:$0xff] %vm676_vm3, %v611_v27  ;;  %1204 = vrot.lane.b32.xlu1 %v3659_v14, %s3071_s24 }
 0x164   : > { %1202 = vrot.lane.b32.xlu0 %v3650_v12, %s3071_s24 }
 0x165   : > { %v1576_v30 = vpop.permute.xlu1 %1575 }
 0x166   : > { %v1385_v28 = vpop.permute.xlu0 %1384  ;;  %1660 = vst.msk [vmem:[#allocation2 + $0x60] sm:$0xff] %vm1647_vm8, %v1576_v30 }
 0x167   : > { %1468 = vst.msk [vmem:[#allocation2 + $0x68] sm:$0xff] %vm1454_vm7, %v1385_v28  ;;  %1400 = vrot.lane.b32.xlu1 %v3457_v58, %s3072_s25 }
 0x168   : > { %1398 = vrot.lane.b32.xlu0 %v3452_v57, %s3072_s25 }
 0x169   : > { %v998_v32 = vpop.permute.xlu1 %997 }
 0x16a   : > { %v807_v34 = vpop.permute.xlu0 %806  ;;  %1080 = vst.msk [vmem:[#allocation2 + $0x70] sm:$0xff] %vm1065_vm5, %v998_v32 }
 0x16b   : > { %888 = vst.msk [vmem:[#allocation2 + $0x78] sm:$0xff] %vm872_vm4, %v807_v34  ;;  %1593 = vrot.lane.b32.xlu1 %v3703_v31, %s3073_s30 }
 0x16c   : > { %1591 = vrot.lane.b32.xlu0 %v3700_v49, %s3073_s30 }
 0x16d   : > { %v1769_v37 = vpop.permute.xlu1 %1768 }
 0x16e   : > { %v1578_v38 = vpop.permute.xlu0 %1577  ;;  %1853 = vst.msk [vmem:[#allocation2 + $0x60] sm:$0xff] %vm1840_vm9, %v1769_v37 }
 0x16f   : > { %1661 = vst.msk [vmem:[#allocation2 + $0x68] sm:$0xff] %vm1647_vm8, %v1578_v38  ;;  %431 = vrot.lane.b32.xlu1 %v3636_v8, %s3068_s21 }
 0x170   : > { %1784 = vrot.lane.b32.xlu0 %v3712_v36, %s3074_s8 }
 0x171   : > { %v1000_v40 = vpop.permute.xlu1 %999 }
 0x172   : > { %v420_v42 = vpop.permute.xlu0 %419  ;;  %1081 = vst.msk [vmem:[#allocation2 + $0x78] sm:$0xff] %vm1065_vm5, %v1000_v40 }
 0x173   : > { %500 = vst.msk [vmem:[#allocation2 + $0x80] sm:$0xff] %vm483_vm2, %v420_v42  ;;  %433 = vrot.lane.b32.xlu1 %v3639_v9, %s3068_s21 }
 0x174   : > { %1786 = vrot.lane.b32.xlu0 %v3721_v55, %s3074_s8 }
 0x175   : > { %v1771_v43 = vpop.permute.xlu1 %1770  ;;  %v1885_v46 = vld [vmem:[#allocation2 + $0x60] sm:$0xff] }
 0x176   : > { %v1191_v44 = vpop.permute.xlu0 %1190  ;;  %1854 = vst.msk [vmem:[#allocation2 + $0x68] sm:$0xff] %vm1840_vm9, %v1771_v43  ;;  %2939 = vmatprep.mubr.msk.f32.mxu0 %vm1910_vm10, %v1885_v46 }
 0x177   : > { %1273 = vst.msk [vmem:[#allocation2 + $0x70] sm:$0xff] %vm1258_vm6, %v1191_v44  ;;  %626 = vrot.lane.b32.xlu1 %v3659_v14, %s3067_s20 }
 0x178   : > { %624 = vrot.lane.b32.xlu0 %v3650_v12, %s3067_s20 }
 0x179   : > { %v613_v48 = vpop.permute.xlu1 %612 }
 0x17a   : > { %v422_v47 = vpop.permute.xlu0 %421  ;;  %693 = vst.msk [vmem:[#allocation2 + $0x80] sm:$0xff] %vm676_vm3, %v613_v48 }
 0x17b   : > { %501 = vst.msk [vmem:[#allocation2 + $0x88] sm:$0xff] %vm483_vm2, %v422_v47  ;;  %822 = vrot.lane.b32.xlu1 %v3457_v58, %s3069_s22 }
 0x17c   : > { %820 = vrot.lane.b32.xlu0 %v3452_v57, %s3069_s22 }
 0x17d   : > { %v1387_v51 = vpop.permute.xlu1 %1386  ;;  %v1886_v35 = vld [vmem:[#allocation2 + $0x68] sm:$0xff] }
 0x17e   : > { %v1193_v50 = vpop.permute.xlu0 %1192  ;;  %1469 = vst.msk [vmem:[#allocation2 + $0x70] sm:$0xff] %vm1454_vm7, %v1387_v51  ;;  %2940 = vmatmul.mubr.msk.f32.gmra.mrb[12].mxu0 %vm1910_vm10, %v1886_v35 }
 0x17f   : > { %1274 = vst.msk [vmem:[#allocation2 + $0x78] sm:$0xff] %vm1258_vm6, %v1193_v50  ;;  %1015 = vrot.lane.b32.xlu1 %v3703_v31, %s3070_s23 }
 0x180   : > { %1013 = vrot.lane.b32.xlu0 %v3700_v49, %s3070_s23 }
 0x181   : > { %v809_v52 = vpop.permute.xlu1 %808 }
 0x182   : > { %v615_v57 = vpop.permute.xlu0 %614  ;;  %889 = vst.msk [vmem:[#allocation2 + $0x80] sm:$0xff] %vm872_vm4, %v809_v52 }
 0x183   : > { %694 = vst.msk [vmem:[#allocation2 + $0x88] sm:$0xff] %vm676_vm3, %v615_v57  ;;  %1208 = vrot.lane.b32.xlu1 %v3721_v55, %s3071_s24 }
 0x184   : > { %1206 = vrot.lane.b32.xlu0 %v3712_v36, %s3071_s24 }
 0x185   : > { %v1580_v53 = vpop.permute.xlu1 %1579 }
 0x186   : > { %v1389_v58 = vpop.permute.xlu0 %1388  ;;  %1662 = vst.msk [vmem:[#allocation2 + $0x70] sm:$0xff] %vm1647_vm8, %v1580_v53  ;;  %v3919_v53 = vld [vmem:[%s3120_s19 + $0x171] sm:$0xff] }
 0x187   : > { %1470 = vst.msk [vmem:[#allocation2 + $0x78] sm:$0xff] %vm1454_vm7, %v1389_v58  ;;  %1404 = vrot.lane.b32.xlu1 %v3509_v18, %s3072_s25  ;;  %v3916_v58 = vld [vmem:[%s3120_s19 + $0x169] sm:$0xff] }
 0x188   : > { %1402 = vrot.lane.b32.xlu0 %v3504_v17, %s3072_s25 }
 0x189   : > { %v1002_v60 = vpop.permute.xlu1 %1001 }
 0x18a   : > { %v811_v59 = vpop.permute.xlu0 %810  ;;  %1082 = vst.msk [vmem:[#allocation2 + $0x80] sm:$0xff] %vm1065_vm5, %v1002_v60  ;;  %v3929_v60 = vld [vmem:[%s3120_s19 + $0x16a] sm:$0xff] }
 0x18b   : > { %890 = vst.msk [vmem:[#allocation2 + $0x88] sm:$0xff] %vm872_vm4, %v811_v59  ;;  %1597 = vrot.lane.b32.xlu1 %v3765_v56, %s3073_s30 }
 0x18c   : > { %1595 = vrot.lane.b32.xlu0 %v3762_v54, %s3073_s30 }
 0x18d   : > { %v1773_v63 = vpop.permute.xlu1 %1772 }
 0x18e   : > { %v1582_v62 = vpop.permute.xlu0 %1581  ;;  %1855 = vst.msk [vmem:[#allocation2 + $0x70] sm:$0xff] %vm1840_vm9, %v1773_v63 }
 0x18f   : > { %1663 = vst.msk [vmem:[#allocation2 + $0x78] sm:$0xff] %vm1647_vm8, %v1582_v62  ;;  %435 = vrot.lane.b32.xlu1 %v3700_v49, %s3068_s21  ;;  %v3863_v49 = vld [vmem:[%s3120_s19 + $0x15a] sm:$0xff] }
 0x190   : > { %1788 = vrot.lane.b32.xlu0 %v3774_v61, %s3074_s8 }
 0x191   : > { %v3785_v2 = vpop.f32.mrb[0].mxu0  ;;  %v1195_v6 = vpop.permute.xlu1 %1194 }
 0x192   : > { %v1004_v1 = vpop.permute.xlu0 %1003  ;;  %v2275_v5 = vmul.f32 %v3785_v2, %v3785_v2  ;;  %v3790_v3 = vpop.f32.mrb[1].mxu0  ;;  %1275 = vst.msk [vmem:[#allocation2 + $0x80] sm:$0xff] %vm1258_vm6, %v1195_v6 }
 0x193   : > { %1083 = vst.msk [vmem:[#allocation2 + $0x88] sm:$0xff] %vm1065_vm5, %v1004_v1  ;;  %v3795_v4 = vadd.f32 %v3785_v2, %v3790_v3  ;;  %v2274_v8 = vmul.f32 %v3790_v3, %v3790_v3  ;;  %437 = vrot.lane.b32.xlu1 %v3703_v31, %s3068_s21  ;;  %v2979_v9 = vpack.c.bf16 %v3785_v2, %v3790_v3 }
 0x194   : > { %1790 = vrot.lane.b32.xlu0 %v3783_v0, %s3074_s8 }
 0x195   : > { %v3805_v10 = vadd.f32 %v2275_v5, %v2274_v8  ;;  %v1887_v12 = vld [vmem:[#allocation2 + $0x70] sm:$0xff]  ;;  %v1197_v41 = vpop.permute.xlu1 %1196 }
 0x196   : > { %v1775_v11 = vpop.permute.xlu0 %1774  ;;  %2942 = vmatprep.mubr.msk.f32.mxu0 %vm1910_vm10, %v1887_v12  ;;  %1276 = vst.msk [vmem:[#allocation2 + $0x88] sm:$0xff] %vm1258_vm6, %v1197_v41 }
 0x197   : > { %1856 = vst.msk [vmem:[#allocation2 + $0x78] sm:$0xff] %vm1840_vm9, %v1775_v11  ;;  %630 = vrot.lane.b32.xlu1 %v3721_v55, %s3067_s20 }
 0x198   : > { %628 = vrot.lane.b32.xlu0 %v3712_v36, %s3067_s20 }
 0x199   : > { %v1393_v14 = vpop.permute.xlu1 %1392 }
 0x19a   : > { %v1391_v13 = vpop.permute.xlu0 %1390  ;;  %1472 = vst.msk [vmem:[#allocation2 + $0x88] sm:$0xff] %vm1454_vm7, %v1393_v14 }
 0x19b   : > { %1471 = vst.msk [vmem:[#allocation2 + $0x80] sm:$0xff] %vm1454_vm7, %v1391_v13  ;;  %826 = vrot.lane.b32.xlu1 %v3509_v18, %s3069_s22 }
 0x19c   : > { %824 = vrot.lane.b32.xlu0 %v3504_v17, %s3069_s22 }
 0x19d   : > { %v1586_v19 = vpop.permute.xlu1 %1585 }
 0x19e   : > { %v1584_v15 = vpop.permute.xlu0 %1583  ;;  %v1888_v16 = vld [vmem:[#allocation2 + $0x78] sm:$0xff]  ;;  %1665 = vst.msk [vmem:[#allocation2 + $0x88] sm:$0xff] %vm1647_vm8, %v1586_v19 }
 0x19f   : > { %1664 = vst.msk [vmem:[#allocation2 + $0x80] sm:$0xff] %vm1647_vm8, %v1584_v15  ;;  %2943 = vmatmul.mubr.msk.f32.gmra.mrb[14].mxu0 %vm1910_vm10, %v1888_v16  ;;  %1019 = vrot.lane.b32.xlu1 %v3765_v56, %s3070_s23 }
 0x1a0   : > { %1017 = vrot.lane.b32.xlu0 %v3762_v54, %s3070_s23 }
 0x1a1   : > { %v424_v18 = vpop.permute.xlu1 %423 }
 0x1a2   : > { %v1777_v17 = vpop.permute.xlu0 %1776  ;;  %502 = vst.msk [vmem:[#allocation2 + $0x90] sm:$0xff] %vm483_vm2, %v424_v18 }
 0x1a3   : > { %1857 = vst.msk [vmem:[#allocation2 + $0x80] sm:$0xff] %vm1840_vm9, %v1777_v17  ;;  %1212 = vrot.lane.b32.xlu1 %v3783_v0, %s3071_s24 }
 0x1a4   : > { %1210 = vrot.lane.b32.xlu0 %v3774_v61, %s3071_s24 }
 0x1a5   : > { %v426_v21 = vpop.permute.xlu1 %425 }
 0x1a6   : > { %v1779_v20 = vpop.permute.xlu0 %1778  ;;  %503 = vst.msk [vmem:[#allocation2 + $0x98] sm:$0xff] %vm483_vm2, %v426_v21 }
 0x1a7   : > { %1858 = vst.msk [vmem:[#allocation2 + $0x88] sm:$0xff] %vm1840_vm9, %v1779_v20  ;;  %1408 = vrot.lane.b32.xlu1 %v3563_v45, %s3072_s25 }
 0x1a8   : > { %1406 = vrot.lane.b32.xlu0 %v3556_v33, %s3072_s25 }
 0x1a9   : > { %v619_v26 = vpop.permute.xlu1 %618 }
 0x1aa   : > { %v617_v24 = vpop.permute.xlu0 %616  ;;  %v1889_v25 = vld [vmem:[#allocation2 + $0x80] sm:$0xff]  ;;  %696 = vst.msk [vmem:[#allocation2 + $0x98] sm:$0xff] %vm676_vm3, %v619_v26  ;;  %v2767_v26 = vld [vmem:[%s3120_s19 + $0x189] sm:$0xff] }
 0x1ab   : > { %695 = vst.msk [vmem:[#allocation2 + $0x90] sm:$0xff] %vm676_vm3, %v617_v24  ;;  %2945 = vmatprep.mubr.msk.f32.mxu0 %vm1910_vm10, %v1889_v25  ;;  %1601 = vrot.lane.b32.xlu1 %v3843_v23, %s3073_s30  ;;  %v2766_v25 = vld [vmem:[%s3120_s19 + $0x181] sm:$0xff] }
 0x1ac   : > { %1599 = vrot.lane.b32.xlu0 %v3840_v22, %s3073_s30 }
 0x1ad   : > { %v815_v28 = vpop.permute.xlu1 %814 }
 0x1ae   : > { %v813_v27 = vpop.permute.xlu0 %812  ;;  %v1890_v30 = vld [vmem:[#allocation2 + $0x88] sm:$0xff]  ;;  %892 = vst.msk [vmem:[#allocation2 + $0x98] sm:$0xff] %vm872_vm4, %v815_v28 }
 0x1af   : > { %891 = vst.msk [vmem:[#allocation2 + $0x90] sm:$0xff] %vm872_vm4, %v813_v27  ;;  %2946 = vmatmul.mubr.msk.f32.gmra.mrb[16].mxu0 %vm1910_vm10, %v1890_v30  ;;  %439 = vrot.lane.b32.xlu1 %v3762_v54, %s3068_s21  ;;  %v2798_v28 = vld [vmem:[%s3120_s19 + $0x182] sm:$0xff] }
 0x1b0   : > { %1792 = vrot.lane.b32.xlu0 %v3853_v29, %s3074_s8 }
 0x1b1   : > { %v3865_v32 = vpop.f32.mrb[2].mxu0  ;;  %v1008_v34 = vpop.permute.xlu1 %1007 }
 0x1b2   : > { %v1006_v31 = vpop.permute.xlu0 %1005  ;;  %v3868_v36 = vpop.f32.mrb[3].mxu0  ;;  %1085 = vst.msk [vmem:[#allocation2 + $0x98] sm:$0xff] %vm1065_vm5, %v1008_v34  ;;  %v2277_v40 = vmul.f32 %v3865_v32, %v3865_v32 }
 0x1b3   : > { %1084 = vst.msk [vmem:[#allocation2 + $0x90] sm:$0xff] %vm1065_vm5, %v1006_v31  ;;  %v2237_v37 = vadd.f32 %v3795_v4, %v3868_v36  ;;  %v2276_v38 = vmul.f32 %v3868_v36, %v3868_v36  ;;  %v2983_v55 = vpack.c.bf16 %v3865_v32, %v3868_v36  ;;  %441 = vrot.lane.b32.xlu1 %v3765_v56, %s3068_s21 }
 0x1b4   : > { %1794 = vrot.lane.b32.xlu0 %v3863_v49, %s3074_s8 }
 0x1b5   : > { %v2307_v42 = vadd.f32 %v3805_v10, %v2276_v38  ;;  %v2238_v44 = vadd.f32 %v3865_v32, %v2237_v37  ;;  %v1201_v46 = vpop.permute.xlu1 %1200  ;;  %v2799_v37 = vld [vmem:[%s3120_s19 + $0x18a] sm:$0xff] }
 0x1b6   : > { %v1199_v43 = vpop.permute.xlu0 %1198  ;;  %1278 = vst.msk [vmem:[#allocation2 + $0x98] sm:$0xff] %vm1258_vm6, %v1201_v46 }
 0x1b7   : > { %1277 = vst.msk [vmem:[#allocation2 + $0x90] sm:$0xff] %vm1258_vm6, %v1199_v43  ;;  %634 = vrot.lane.b32.xlu1 %v3783_v0, %s3067_s20  ;;  %v2308_v47 = vadd.f32 %v2307_v42, %v2277_v40  ;;  %v3939_v0 = vld [vmem:[%s3120_s19 + $0x172] sm:$0xff] }
 0x1b8   : > { %632 = vrot.lane.b32.xlu0 %v3774_v61, %s3067_s20 }
 0x1b9   : > { %v1397_v50 = vpop.permute.xlu1 %1396 }
 0x1ba   : > { %v1395_v48 = vpop.permute.xlu0 %1394  ;;  %1474 = vst.msk [vmem:[#allocation2 + $0x98] sm:$0xff] %vm1454_vm7, %v1397_v50 }
 0x1bb   : > { %1473 = vst.msk [vmem:[#allocation2 + $0x90] sm:$0xff] %vm1454_vm7, %v1395_v48  ;;  %830 = vrot.lane.b32.xlu1 %v3563_v45, %s3069_s22 }
 0x1bc   : > { %828 = vrot.lane.b32.xlu0 %v3556_v33, %s3069_s22 }
 0x1bd   : > { %v1590_v35 = vpop.permute.xlu1 %1589 }
 0x1be   : > { %v1588_v51 = vpop.permute.xlu0 %1587  ;;  %1667 = vst.msk [vmem:[#allocation2 + $0x98] sm:$0xff] %vm1647_vm8, %v1590_v35 }
 0x1bf   : > { %1666 = vst.msk [vmem:[#allocation2 + $0x90] sm:$0xff] %vm1647_vm8, %v1588_v51  ;;  %1023 = vrot.lane.b32.xlu1 %v3843_v23, %s3070_s23 }
 0x1c0   : > { %1021 = vrot.lane.b32.xlu0 %v3840_v22, %s3070_s23 }
 0x1c1   : > { %v428_v33 = vpop.permute.xlu1 %427 }
 0x1c2   : > { %v1781_v57 = vpop.permute.xlu0 %1780  ;;  %504 = vst.msk [vmem:[#allocation2 + $0xa0] sm:$0xff] %vm483_vm2, %v428_v33 }
 0x1c3   : > { %1859 = vst.msk [vmem:[#allocation2 + $0x90] sm:$0xff] %vm1840_vm9, %v1781_v57  ;;  %1216 = vrot.lane.b32.xlu1 %v3863_v49, %s3071_s24 }
 0x1c4   : > { %1214 = vrot.lane.b32.xlu0 %v3853_v29, %s3071_s24 }
 0x1c5   : > { %v430_v52 = vpop.permute.xlu1 %429 }
 0x1c6   : > { %v1783_v45 = vpop.permute.xlu0 %1782  ;;  %505 = vst.msk [vmem:[#allocation2 + $0xa8] sm:$0xff] %vm483_vm2, %v430_v52 }
 0x1c7   : > { %1860 = vst.msk [vmem:[#allocation2 + $0x98] sm:$0xff] %vm1840_vm9, %v1783_v45  ;;  %1412 = vrot.lane.b32.xlu1 %v3631_v7, %s3072_s25 }
 0x1c8   : > { %1410 = vrot.lane.b32.xlu0 %v3624_v39, %s3072_s25 }
 0x1c9   : > { %v623_v59 = vpop.permute.xlu1 %622 }
 0x1ca   : > { %v621_v54 = vpop.permute.xlu0 %620  ;;  %v1891_v56 = vld [vmem:[#allocation2 + $0x90] sm:$0xff]  ;;  %698 = vst.msk [vmem:[#allocation2 + $0xa8] sm:$0xff] %vm676_vm3, %v623_v59  ;;  %v2736_v59 = vld [vmem:[%s3120_s19 + $0x198] sm:$0xff] }
 0x1cb   : > { %697 = vst.msk [vmem:[#allocation2 + $0xa0] sm:$0xff] %vm676_vm3, %v621_v54  ;;  %2948 = vmatprep.mubr.msk.f32.mxu0 %vm1910_vm10, %v1891_v56  ;;  %1605 = vrot.lane.b32.xlu1 %v3919_v53, %s3073_s30 }
 0x1cc   : > { %1603 = vrot.lane.b32.xlu0 %v3916_v58, %s3073_s30 }
 0x1cd   : > { %v819_v63 = vpop.permute.xlu1 %818 }
 0x1ce   : > { %v817_v61 = vpop.permute.xlu0 %816  ;;  %v1892_v62 = vld [vmem:[#allocation2 + $0x98] sm:$0xff]  ;;  %894 = vst.msk [vmem:[#allocation2 + $0xa8] sm:$0xff] %vm872_vm4, %v819_v63 }
 0x1cf   : > { %893 = vst.msk [vmem:[#allocation2 + $0xa0] sm:$0xff] %vm872_vm4, %v817_v61  ;;  %2949 = vmatmul.mubr.msk.f32.gmra.mrb[18].mxu0 %vm1910_vm10, %v1892_v62  ;;  %443 = vrot.lane.b32.xlu1 %v3840_v22, %s3068_s21  ;;  %v2735_v22 = vld [vmem:[%s3120_s19 + $0x188] sm:$0xff]  ;;  %v2768_v63 = vld [vmem:[%s3120_s19 + $0x199] sm:$0xff] }
 0x1d0   : > { %1796 = vrot.lane.b32.xlu0 %v3929_v60, %s3074_s8 }
 0x1d1   : > { %v3941_v5 = vpop.f32.mrb[4].mxu0  ;;  %v1012_v6 = vpop.permute.xlu1 %1011 }
 0x1d2   : > { %v1010_v1 = vpop.permute.xlu0 %1009  ;;  %v3944_v4 = vpop.f32.mrb[5].mxu0  ;;  %1087 = vst.msk [vmem:[#allocation2 + $0xa8] sm:$0xff] %vm1065_vm5, %v1012_v6  ;;  %v2279_v12 = vmul.f32 %v3941_v5, %v3941_v5 }
 0x1d3   : > { %1086 = vst.msk [vmem:[#allocation2 + $0xa0] sm:$0xff] %vm1065_vm5, %v1010_v1  ;;  %v2239_v8 = vadd.f32 %v2238_v44, %v3944_v4  ;;  %v2278_v10 = vmul.f32 %v3944_v4, %v3944_v4  ;;  %v2987_v11 = vpack.c.bf16 %v3941_v5, %v3944_v4  ;;  %445 = vrot.lane.b32.xlu1 %v3843_v23, %s3068_s21 }
 0x1d4   : > { %1798 = vrot.lane.b32.xlu0 %v3939_v0, %s3074_s8 }
 0x1d5   : > { %v2309_v41 = vadd.f32 %v2308_v47, %v2278_v10  ;;  %v2240_v14 = vadd.f32 %v3941_v5, %v2239_v8  ;;  %v1205_v15 = vpop.permute.xlu1 %1204  ;;  %v2800_v10 = vld [vmem:[%s3120_s19 + $0x19a] sm:$0xff]  ;;  %v3075_v5 = vmov 1.0  }
 0x1d6   : > { %v1203_v13 = vpop.permute.xlu0 %1202  ;;  %1280 = vst.msk [vmem:[#allocation2 + $0xa8] sm:$0xff] %vm1258_vm6, %v1205_v15 }
 0x1d7   : > { %1279 = vst.msk [vmem:[#allocation2 + $0xa0] sm:$0xff] %vm1258_vm6, %v1203_v13  ;;  %638 = vrot.lane.b32.xlu1 %v3863_v49, %s3067_s20  ;;  %v2310_v16 = vadd.f32 %v2309_v41, %v2279_v12  ;;  %v2801_v12 = vld [vmem:[%s3120_s19 + $0x1a2] sm:$0xff] }
 0x1d8   : > { %636 = vrot.lane.b32.xlu0 %v3853_v29, %s3067_s20 }
 0x1d9   : > { %v1401_v17 = vpop.permute.xlu1 %1400 }
 0x1da   : > { %v1399_v19 = vpop.permute.xlu0 %1398  ;;  %1476 = vst.msk [vmem:[#allocation2 + $0xa8] sm:$0xff] %vm1454_vm7, %v1401_v17 }
 0x1db   : > { %1475 = vst.msk [vmem:[#allocation2 + $0xa0] sm:$0xff] %vm1454_vm7, %v1399_v19  ;;  %834 = vrot.lane.b32.xlu1 %v3631_v7, %s3069_s22  ;;  %v2734_v7 = vld [vmem:[%s3120_s19 + $0x180] sm:$0xff] }
 0x1dc   : > { %832 = vrot.lane.b32.xlu0 %v3624_v39, %s3069_s22 }
 0x1dd   : > { %v1594_v20 = vpop.permute.xlu1 %1593 }
 0x1de   : > { %v1592_v18 = vpop.permute.xlu0 %1591  ;;  %1669 = vst.msk [vmem:[#allocation2 + $0xa8] sm:$0xff] %vm1647_vm8, %v1594_v20 }
 0x1df   : > { %1668 = vst.msk [vmem:[#allocation2 + $0xa0] sm:$0xff] %vm1647_vm8, %v1592_v18  ;;  %1027 = vrot.lane.b32.xlu1 %v3919_v53, %s3070_s23 }
 0x1e0   : > { %1025 = vrot.lane.b32.xlu0 %v3916_v58, %s3070_s23 }
 0x1e1   : > { %v432_v39 = vpop.permute.xlu1 %431 }
 0x1e2   : > { %v1785_v21 = vpop.permute.xlu0 %1784  ;;  %506 = vst.msk [vmem:[#allocation2 + $0xb0] sm:$0xff] %vm483_vm2, %v432_v39 }
 0x1e3   : > { %1861 = vst.msk [vmem:[#allocation2 + $0xa0] sm:$0xff] %vm1840_vm9, %v1785_v21  ;;  %1220 = vrot.lane.b32.xlu1 %v3939_v0, %s3071_s24 }
 0x1e4   : > { %1218 = vrot.lane.b32.xlu0 %v3929_v60, %s3071_s24 }
 0x1e5   : > { %v434_v24 = vpop.permute.xlu1 %433 }
 0x1e6   : > { %v1787_v23 = vpop.permute.xlu0 %1786  ;;  %507 = vst.msk [vmem:[#allocation2 + $0xb8] sm:$0xff] %vm483_vm2, %v434_v24 }
 0x1e7   : > { %1862 = vst.msk [vmem:[#allocation2 + $0xa8] sm:$0xff] %vm1840_vm9, %v1787_v23  ;;  %1416 = vrot.lane.b32.xlu1 %v2735_v22, %s3072_s25 }
 0x1e8   : > { %1414 = vrot.lane.b32.xlu0 %v2734_v7, %s3072_s25 }
 0x1e9   : > { %v627_v30 = vpop.permute.xlu1 %626 }
 0x1ea   : > { %v625_v29 = vpop.permute.xlu0 %624  ;;  %v1893_v27 = vld [vmem:[#allocation2 + $0xa0] sm:$0xff]  ;;  %700 = vst.msk [vmem:[#allocation2 + $0xb8] sm:$0xff] %vm676_vm3, %v627_v30 }
 0x1eb   : > { %699 = vst.msk [vmem:[#allocation2 + $0xb0] sm:$0xff] %vm676_vm3, %v625_v29  ;;  %2951 = vmatprep.mubr.msk.f32.mxu0 %vm1910_vm10, %v1893_v27  ;;  %1609 = vrot.lane.b32.xlu1 %v2767_v26, %s3073_s30 }
 0x1ec   : > { %1607 = vrot.lane.b32.xlu0 %v2766_v25, %s3073_s30 }
 0x1ed   : > { %v823_v34 = vpop.permute.xlu1 %822 }
 0x1ee   : > { %v821_v49 = vpop.permute.xlu0 %820  ;;  %v1894_v31 = vld [vmem:[#allocation2 + $0xa8] sm:$0xff]  ;;  %896 = vst.msk [vmem:[#allocation2 + $0xb8] sm:$0xff] %vm872_vm4, %v823_v34 }
 0x1ef   : > { %895 = vst.msk [vmem:[#allocation2 + $0xb0] sm:$0xff] %vm872_vm4, %v821_v49  ;;  %2952 = vmatmul.mubr.msk.f32.gmra.mrb[20].mxu0 %vm1910_vm10, %v1894_v31  ;;  %447 = vrot.lane.b32.xlu1 %v3916_v58, %s3068_s21 }
 0x1f0   : > { %1800 = vrot.lane.b32.xlu0 %v2798_v28, %s3074_s8 }
 0x1f1   : > { %v4004_v40 = vpop.f32.mrb[6].mxu0  ;;  %v1016_v42 = vpop.permute.xlu1 %1015 }
 0x1f2   : > { %v1014_v38 = vpop.permute.xlu0 %1013  ;;  %v4007_v43 = vpop.f32.mrb[7].mxu0  ;;  %1089 = vst.msk [vmem:[#allocation2 + $0xb8] sm:$0xff] %vm1065_vm5, %v1016_v42  ;;  %v2281_v48 = vmul.f32 %v4004_v40, %v4004_v40 }
 0x1f3   : > { %1088 = vst.msk [vmem:[#allocation2 + $0xb0] sm:$0xff] %vm1065_vm5, %v1014_v38  ;;  %v2241_v44 = vadd.f32 %v2240_v14, %v4007_v43  ;;  %v2280_v46 = vmul.f32 %v4007_v43, %v4007_v43  ;;  %v2991_v47 = vpack.c.bf16 %v4004_v40, %v4007_v43  ;;  %449 = vrot.lane.b32.xlu1 %v3919_v53, %s3068_s21 }
 0x1f4   : > { %1802 = vrot.lane.b32.xlu0 %v2799_v37, %s3074_s8 }
 0x1f5   : > { %v2311_v50 = vadd.f32 %v2310_v16, %v2280_v46  ;;  %v2242_v35 = vadd.f32 %v4004_v40, %v2241_v44  ;;  %v1209_v57 = vpop.permute.xlu1 %1208 }
 0x1f6   : > { %v1207_v51 = vpop.permute.xlu0 %1206  ;;  %1282 = vst.msk [vmem:[#allocation2 + $0xb8] sm:$0xff] %vm1258_vm6, %v1209_v57 }
 0x1f7   : > { %1281 = vst.msk [vmem:[#allocation2 + $0xb0] sm:$0xff] %vm1258_vm6, %v1207_v51  ;;  %642 = vrot.lane.b32.xlu1 %v3939_v0, %s3067_s20  ;;  %v2312_v33 = vadd.f32 %v2311_v50, %v2281_v48  ;;  %v2769_v0 = vld [vmem:[%s3120_s19 + $0x1a1] sm:$0xff] }
 0x1f8   : > { %640 = vrot.lane.b32.xlu0 %v3929_v60, %s3067_s20  ;;  %v2737_v60 = vld [vmem:[%s3120_s19 + $0x1a0] sm:$0xff]  ;;  %s2839_s19 = sshll.u32 %s4225_s12, 4 }
 0x1f9   : > { %v1405_v52 = vpop.permute.xlu1 %1404 }
 0x1fa   : > { %v1403_v45 = vpop.permute.xlu0 %1402  ;;  %1478 = vst.msk [vmem:[#allocation2 + $0xb8] sm:$0xff] %vm1454_vm7, %v1405_v52 }
 0x1fb   : > { %1477 = vst.msk [vmem:[#allocation2 + $0xb0] sm:$0xff] %vm1454_vm7, %v1403_v45  ;;  %838 = vrot.lane.b32.xlu1 %v2735_v22, %s3069_s22 }
 0x1fc   : > { %836 = vrot.lane.b32.xlu0 %v2734_v7, %s3069_s22  ;;  %s243_s22 = scalar_lea.vmem %s4218_s2, %s2839_s19 }
 0x1fd   : > { %v1598_v53 = vpop.permute.xlu1 %1597 }
 0x1fe   : > { %v1596_v58 = vpop.permute.xlu0 %1595  ;;  %1671 = vst.msk [vmem:[#allocation2 + $0xb8] sm:$0xff] %vm1647_vm8, %v1598_v53 }
 0x1ff   : > { %1670 = vst.msk [vmem:[#allocation2 + $0xb0] sm:$0xff] %vm1647_vm8, %v1596_v58  ;;  %1031 = vrot.lane.b32.xlu1 %v2767_v26, %s3070_s23 }
 0x200   : > { %1029 = vrot.lane.b32.xlu0 %v2766_v25, %s3070_s23 }
 0x201   : > { %v436_v56 = vpop.permute.xlu1 %435 }
 0x202   : > { %v1789_v54 = vpop.permute.xlu0 %1788  ;;  %508 = vst.msk [vmem:[#allocation2 + $0xc0] sm:$0xff] %vm483_vm2, %v436_v56 }
 0x203   : > { %1863 = vst.msk [vmem:[#allocation2 + $0xb0] sm:$0xff] %vm1840_vm9, %v1789_v54  ;;  %1224 = vrot.lane.b32.xlu1 %v2799_v37, %s3071_s24 }
 0x204   : > { %1222 = vrot.lane.b32.xlu0 %v2798_v28, %s3071_s24 }
 0x205   : > { %v438_v62 = vpop.permute.xlu1 %437 }
 0x206   : > { %v1791_v61 = vpop.permute.xlu0 %1790  ;;  %509 = vst.msk [vmem:[#allocation2 + $0xc8] sm:$0xff] %vm483_vm2, %v438_v62 }
 0x207   : > { %1864 = vst.msk [vmem:[#allocation2 + $0xb8] sm:$0xff] %vm1840_vm9, %v1791_v61  ;;  %1420 = vrot.lane.b32.xlu1 %v2737_v60, %s3072_s25 }
 0x208   : > { %1418 = vrot.lane.b32.xlu0 %v2736_v59, %s3072_s25 }
 0x209   : > { %v631_v8 = vpop.permute.xlu1 %630 }
 0x20a   : > { %v629_v1 = vpop.permute.xlu0 %628  ;;  %v1895_v6 = vld [vmem:[#allocation2 + $0xb0] sm:$0xff]  ;;  %702 = vst.msk [vmem:[#allocation2 + $0xc8] sm:$0xff] %vm676_vm3, %v631_v8 }
 0x20b   : > { %701 = vst.msk [vmem:[#allocation2 + $0xc0] sm:$0xff] %vm676_vm3, %v629_v1  ;;  %2954 = vmatprep.mubr.msk.f32.mxu0 %vm1910_vm10, %v1895_v6  ;;  %1613 = vrot.lane.b32.xlu1 %v2769_v0, %s3073_s30 }
 0x20c   : > { %1611 = vrot.lane.b32.xlu0 %v2768_v63, %s3073_s30 }
 0x20d   : > { %v827_v14 = vpop.permute.xlu1 %826 }
 0x20e   : > { %v825_v41 = vpop.permute.xlu0 %824  ;;  %v1896_v13 = vld [vmem:[#allocation2 + $0xb8] sm:$0xff]  ;;  %898 = vst.msk [vmem:[#allocation2 + $0xc8] sm:$0xff] %vm872_vm4, %v827_v14 }
 0x20f   : > { %897 = vst.msk [vmem:[#allocation2 + $0xc0] sm:$0xff] %vm872_vm4, %v825_v41  ;;  %2955 = vmatmul.mubr.msk.f32.gmra.mrb[22].mxu0 %vm1910_vm10, %v1896_v13  ;;  %1806 = vrot.lane.b32.xlu1 %v2801_v12, %s3074_s8 }
 0x210   : > { %1804 = vrot.lane.b32.xlu0 %v2800_v10, %s3074_s8 }
 0x211   : > { %v4059_v16 = vpop.f32.mrb[8].mxu0  ;;  %v1020_v19 = vpop.permute.xlu1 %1019 }
 0x212   : > { %v1018_v15 = vpop.permute.xlu0 %1017  ;;  %v4062_v17 = vpop.f32.mrb[9].mxu0  ;;  %1091 = vst.msk [vmem:[#allocation2 + $0xc8] sm:$0xff] %vm1065_vm5, %v1020_v19  ;;  %v2283_v39 = vmul.f32 %v4059_v16, %v4059_v16 }
 0x213   : > { %1090 = vst.msk [vmem:[#allocation2 + $0xc0] sm:$0xff] %vm1065_vm5, %v1018_v15  ;;  %v2243_v18 = vadd.f32 %v2242_v35, %v4062_v17  ;;  %v2282_v20 = vmul.f32 %v4062_v17, %v4062_v17  ;;  %v2995_v21 = vpack.c.bf16 %v4059_v16, %v4062_v17 }
 0x215   : > { %v2313_v7 = vadd.f32 %v2312_v33, %v2282_v20  ;;  %v2244_v23 = vadd.f32 %v4059_v16, %v2243_v18  ;;  %v1213_v24 = vpop.permute.xlu1 %1212 }
 0x216   : > { %v1211_v22 = vpop.permute.xlu0 %1210  ;;  %1284 = vst.msk [vmem:[#allocation2 + $0xc8] sm:$0xff] %vm1258_vm6, %v1213_v24 }
 0x217   : > { %1283 = vst.msk [vmem:[#allocation2 + $0xc0] sm:$0xff] %vm1258_vm6, %v1211_v22  ;;  %v2314_v25 = vadd.f32 %v2313_v7, %v2283_v39 }
 0x219   : > { %v1409_v29 = vpop.permute.xlu1 %1408 }
 0x21a   : > { %v1407_v26 = vpop.permute.xlu0 %1406  ;;  %1480 = vst.msk [vmem:[#allocation2 + $0xc8] sm:$0xff] %vm1454_vm7, %v1409_v29 }
 0x21b   : > { %1479 = vst.msk [vmem:[#allocation2 + $0xc0] sm:$0xff] %vm1454_vm7, %v1407_v26 }
 0x21d   : > { %v1602_v30 = vpop.permute.xlu1 %1601 }
 0x21e   : > { %v1600_v27 = vpop.permute.xlu0 %1599  ;;  %1673 = vst.msk [vmem:[#allocation2 + $0xc8] sm:$0xff] %vm1647_vm8, %v1602_v30 }
 0x21f   : > { %1672 = vst.msk [vmem:[#allocation2 + $0xc0] sm:$0xff] %vm1647_vm8, %v1600_v27 }
 0x221   : > { %v440_v49 = vpop.permute.xlu1 %439 }
 0x222   : > { %v1793_v28 = vpop.permute.xlu0 %1792  ;;  %510 = vst.msk [vmem:[#allocation2 + $0xd0] sm:$0xff] %vm483_vm2, %v440_v49 }
 0x223   : > { %1865 = vst.msk [vmem:[#allocation2 + $0xc0] sm:$0xff] %vm1840_vm9, %v1793_v28 }
 0x225   : > { %v442_v34 = vpop.permute.xlu1 %441 }
 0x226   : > { %v1795_v31 = vpop.permute.xlu0 %1794  ;;  %511 = vst.msk [vmem:[#allocation2 + $0xd8] sm:$0xff] %vm483_vm2, %v442_v34 }
 0x227   : > { %1866 = vst.msk [vmem:[#allocation2 + $0xc8] sm:$0xff] %vm1840_vm9, %v1795_v31 }
 0x229   : > { %v635_v42 = vpop.permute.xlu1 %634 }
 0x22a   : > { %v633_v37 = vpop.permute.xlu0 %632  ;;  %v1897_v38 = vld [vmem:[#allocation2 + $0xc0] sm:$0xff]  ;;  %704 = vst.msk [vmem:[#allocation2 + $0xd8] sm:$0xff] %vm676_vm3, %v635_v42 }
 0x22b   : > { %703 = vst.msk [vmem:[#allocation2 + $0xd0] sm:$0xff] %vm676_vm3, %v633_v37  ;;  %2957 = vmatprep.mubr.msk.f32.mxu0 %vm1910_vm10, %v1897_v38 }
 0x22d   : > { %v831_v48 = vpop.permute.xlu1 %830 }
 0x22e   : > { %v829_v44 = vpop.permute.xlu0 %828  ;;  %v1898_v46 = vld [vmem:[#allocation2 + $0xc8] sm:$0xff]  ;;  %900 = vst.msk [vmem:[#allocation2 + $0xd8] sm:$0xff] %vm872_vm4, %v831_v48 }
 0x22f   : > { %899 = vst.msk [vmem:[#allocation2 + $0xd0] sm:$0xff] %vm872_vm4, %v829_v44  ;;  %2958 = vmatmul.mubr.msk.f32.gmra.mrb[24].mxu0 %vm1910_vm10, %v1898_v46 }
 0x231   : > { %v4089_v51 = vpop.f32.mrb[10].mxu0  ;;  %v1024_v35 = vpop.permute.xlu1 %1023 }
 0x232   : > { %v1022_v50 = vpop.permute.xlu0 %1021  ;;  %v4092_v57 = vpop.f32.mrb[11].mxu0  ;;  %1093 = vst.msk [vmem:[#allocation2 + $0xd8] sm:$0xff] %vm1065_vm5, %v1024_v35  ;;  %v2285_v58 = vmul.f32 %v4089_v51, %v4089_v51 }
 0x233   : > { %1092 = vst.msk [vmem:[#allocation2 + $0xd0] sm:$0xff] %vm1065_vm5, %v1022_v50  ;;  %v2245_v33 = vadd.f32 %v2244_v23, %v4092_v57  ;;  %v2284_v45 = vmul.f32 %v4092_v57, %v4092_v57  ;;  %v2999_v52 = vpack.c.bf16 %v4089_v51, %v4092_v57 }
 0x235   : > { %v2315_v53 = vadd.f32 %v2314_v25, %v2284_v45  ;;  %v2246_v56 = vadd.f32 %v4089_v51, %v2245_v33  ;;  %v1217_v59 = vpop.permute.xlu1 %1216 }
 0x236   : > { %v1215_v54 = vpop.permute.xlu0 %1214  ;;  %1286 = vst.msk [vmem:[#allocation2 + $0xd8] sm:$0xff] %vm1258_vm6, %v1217_v59 }
 0x237   : > { %1285 = vst.msk [vmem:[#allocation2 + $0xd0] sm:$0xff] %vm1258_vm6, %v1215_v54  ;;  %v2316_v60 = vadd.f32 %v2315_v53, %v2285_v58 }
 0x239   : > { %v1413_v62 = vpop.permute.xlu1 %1412 }
 0x23a   : > { %v1411_v61 = vpop.permute.xlu0 %1410  ;;  %1482 = vst.msk [vmem:[#allocation2 + $0xd8] sm:$0xff] %vm1454_vm7, %v1413_v62 }
 0x23b   : > { %1481 = vst.msk [vmem:[#allocation2 + $0xd0] sm:$0xff] %vm1454_vm7, %v1411_v61 }
 0x23d   : > { %v1606_v0 = vpop.permute.xlu1 %1605 }
 0x23e   : > { %v1604_v63 = vpop.permute.xlu0 %1603  ;;  %1675 = vst.msk [vmem:[#allocation2 + $0xd8] sm:$0xff] %vm1647_vm8, %v1606_v0 }
 0x23f   : > { %1674 = vst.msk [vmem:[#allocation2 + $0xd0] sm:$0xff] %vm1647_vm8, %v1604_v63 }
 0x241   : > { %v444_v6 = vpop.permute.xlu1 %443 }
 0x242   : > { %v1797_v1 = vpop.permute.xlu0 %1796  ;;  %512 = vst.msk [vmem:[#allocation2 + $0xe0] sm:$0xff] %vm483_vm2, %v444_v6 }
 0x243   : > { %1867 = vst.msk [vmem:[#allocation2 + $0xd0] sm:$0xff] %vm1840_vm9, %v1797_v1 }
 0x245   : > { %v446_v10 = vpop.permute.xlu1 %445 }
 0x246   : > { %v1799_v8 = vpop.permute.xlu0 %1798  ;;  %513 = vst.msk [vmem:[#allocation2 + $0xe8] sm:$0xff] %vm483_vm2, %v446_v10 }
 0x247   : > { %1868 = vst.msk [vmem:[#allocation2 + $0xd8] sm:$0xff] %vm1840_vm9, %v1799_v8 }
 0x249   : > { %v639_v13 = vpop.permute.xlu1 %638 }
 0x24a   : > { %v637_v12 = vpop.permute.xlu0 %636  ;;  %v1899_v41 = vld [vmem:[#allocation2 + $0xd0] sm:$0xff]  ;;  %706 = vst.msk [vmem:[#allocation2 + $0xe8] sm:$0xff] %vm676_vm3, %v639_v13 }
 0x24b   : > { %705 = vst.msk [vmem:[#allocation2 + $0xe0] sm:$0xff] %vm676_vm3, %v637_v12  ;;  %2960 = vmatprep.mubr.msk.f32.mxu0 %vm1910_vm10, %v1899_v41 }
 0x24d   : > { %v835_v19 = vpop.permute.xlu1 %834 }
 0x24e   : > { %v833_v14 = vpop.permute.xlu0 %832  ;;  %v1900_v15 = vld [vmem:[#allocation2 + $0xd8] sm:$0xff]  ;;  %902 = vst.msk [vmem:[#allocation2 + $0xe8] sm:$0xff] %vm872_vm4, %v835_v19 }
 0x24f   : > { %901 = vst.msk [vmem:[#allocation2 + $0xe0] sm:$0xff] %vm872_vm4, %v833_v14  ;;  %2961 = vmatmul.mubr.msk.f32.gmra.mrb[26].mxu0 %vm1910_vm10, %v1900_v15 }
 0x251   : > { %v4119_v20 = vpop.f32.mrb[12].mxu0  ;;  %v1028_v39 = vpop.permute.xlu1 %1027 }
 0x252   : > { %v1026_v18 = vpop.permute.xlu0 %1025  ;;  %v4122_v7 = vpop.f32.mrb[13].mxu0  ;;  %1095 = vst.msk [vmem:[#allocation2 + $0xe8] sm:$0xff] %vm1065_vm5, %v1028_v39  ;;  %v2287_v25 = vmul.f32 %v4119_v20, %v4119_v20 }
 0x253   : > { %1094 = vst.msk [vmem:[#allocation2 + $0xe0] sm:$0xff] %vm1065_vm5, %v1026_v18  ;;  %v2247_v22 = vadd.f32 %v2246_v56, %v4122_v7  ;;  %v2286_v23 = vmul.f32 %v4122_v7, %v4122_v7  ;;  %v3003_v24 = vpack.c.bf16 %v4119_v20, %v4122_v7 }
 0x255   : > { %v2317_v26 = vadd.f32 %v2316_v60, %v2286_v23  ;;  %v2248_v27 = vadd.f32 %v4119_v20, %v2247_v22  ;;  %v1221_v30 = vpop.permute.xlu1 %1220 }
 0x256   : > { %v1219_v29 = vpop.permute.xlu0 %1218  ;;  %1288 = vst.msk [vmem:[#allocation2 + $0xe8] sm:$0xff] %vm1258_vm6, %v1221_v30 }
 0x257   : > { %1287 = vst.msk [vmem:[#allocation2 + $0xe0] sm:$0xff] %vm1258_vm6, %v1219_v29  ;;  %v2318_v28 = vadd.f32 %v2317_v26, %v2287_v25 }
 0x259   : > { %v1417_v31 = vpop.permute.xlu1 %1416 }
 0x25a   : > { %v1415_v49 = vpop.permute.xlu0 %1414  ;;  %1484 = vst.msk [vmem:[#allocation2 + $0xe8] sm:$0xff] %vm1454_vm7, %v1417_v31 }
 0x25b   : > { %1483 = vst.msk [vmem:[#allocation2 + $0xe0] sm:$0xff] %vm1454_vm7, %v1415_v49 }
 0x25d   : > { %v1610_v37 = vpop.permute.xlu1 %1609 }
 0x25e   : > { %v1608_v34 = vpop.permute.xlu0 %1607  ;;  %1677 = vst.msk [vmem:[#allocation2 + $0xe8] sm:$0xff] %vm1647_vm8, %v1610_v37 }
 0x25f   : > { %1676 = vst.msk [vmem:[#allocation2 + $0xe0] sm:$0xff] %vm1647_vm8, %v1608_v34 }
 0x261   : > { %v448_v42 = vpop.permute.xlu1 %447 }
 0x262   : > { %v1801_v38 = vpop.permute.xlu0 %1800  ;;  %514 = vst.msk [vmem:[#allocation2 + $0xf0] sm:$0xff] %vm483_vm2, %v448_v42 }
 0x263   : > { %1869 = vst.msk [vmem:[#allocation2 + $0xe0] sm:$0xff] %vm1840_vm9, %v1801_v38 }
 0x265   : > { %v450_v46 = vpop.permute.xlu1 %449 }
 0x266   : > { %v1803_v44 = vpop.permute.xlu0 %1802  ;;  %515 = vst.msk [vmem:[#allocation2 + $0xf8] sm:$0xff] %vm483_vm2, %v450_v46 }
 0x267   : > { %1870 = vst.msk [vmem:[#allocation2 + $0xe8] sm:$0xff] %vm1840_vm9, %v1803_v44 }
 0x269   : > { %v643_v35 = vpop.permute.xlu1 %642 }
 0x26a   : > { %v641_v48 = vpop.permute.xlu0 %640  ;;  %v1901_v50 = vld [vmem:[#allocation2 + $0xe0] sm:$0xff]  ;;  %708 = vst.msk [vmem:[#allocation2 + $0xf8] sm:$0xff] %vm676_vm3, %v643_v35 }
 0x26b   : > { %707 = vst.msk [vmem:[#allocation2 + $0xf0] sm:$0xff] %vm676_vm3, %v641_v48  ;;  %2963 = vmatprep.mubr.msk.f32.mxu0 %vm1910_vm10, %v1901_v50 }
 0x26d   : > { %v839_v58 = vpop.permute.xlu1 %838 }
 0x26e   : > { %v837_v33 = vpop.permute.xlu0 %836  ;;  %v1902_v45 = vld [vmem:[#allocation2 + $0xe8] sm:$0xff]  ;;  %904 = vst.msk [vmem:[#allocation2 + $0xf8] sm:$0xff] %vm872_vm4, %v839_v58 }
 0x26f   : > { %903 = vst.msk [vmem:[#allocation2 + $0xf0] sm:$0xff] %vm872_vm4, %v837_v33  ;;  %2964 = vmatmul.mubr.msk.f32.gmra.mrb[28].mxu0 %vm1910_vm10, %v1902_v45 }
 0x271   : > { %v1032_v56 = vpop.permute.xlu1 %1031 }
 0x272   : > { %v1030_v53 = vpop.permute.xlu0 %1029  ;;  %v4149_v54 = vpop.f32.mrb[14].mxu0  ;;  %1097 = vst.msk [vmem:[#allocation2 + $0xf8] sm:$0xff] %vm1065_vm5, %v1032_v56 }
 0x273   : > { %1096 = vst.msk [vmem:[#allocation2 + $0xf0] sm:$0xff] %vm1065_vm5, %v1030_v53  ;;  %v4152_v59 = vpop.f32.mrb[15].mxu0  ;;  %v2289_v63 = vmul.f32 %v4149_v54, %v4149_v54 }
 0x274   : > { %v2249_v60 = vadd.f32 %v2248_v27, %v4152_v59  ;;  %v2288_v61 = vmul.f32 %v4152_v59, %v4152_v59  ;;  %v3007_v62 = vpack.c.bf16 %v4149_v54, %v4152_v59 }
 0x275   : > { %v1225_v8 = vpop.permute.xlu1 %1224 }
 0x276   : > { %v2319_v0 = vadd.f32 %v2318_v28, %v2288_v61  ;;  %v1223_v1 = vpop.permute.xlu0 %1222  ;;  %v2250_v6 = vadd.f32 %v4149_v54, %v2249_v60  ;;  %1290 = vst.msk [vmem:[#allocation2 + $0xf8] sm:$0xff] %vm1258_vm6, %v1225_v8 }
 0x277   : > { %1289 = vst.msk [vmem:[#allocation2 + $0xf0] sm:$0xff] %vm1258_vm6, %v1223_v1 }
 0x278   : > { %v2320_v10 = vadd.f32 %v2319_v0, %v2289_v63 }
 0x279   : > { %v1421_v41 = vpop.permute.xlu1 %1420 }
 0x27a   : > { %v1419_v12 = vpop.permute.xlu0 %1418  ;;  %1486 = vst.msk [vmem:[#allocation2 + $0xf8] sm:$0xff] %vm1454_vm7, %v1421_v41 }
 0x27b   : > { %1485 = vst.msk [vmem:[#allocation2 + $0xf0] sm:$0xff] %vm1454_vm7, %v1419_v12 }
 0x27d   : > { %v1614_v14 = vpop.permute.xlu1 %1613 }
 0x27e   : > { %v1612_v13 = vpop.permute.xlu0 %1611  ;;  %1679 = vst.msk [vmem:[#allocation2 + $0xf8] sm:$0xff] %vm1647_vm8, %v1614_v14 }
 0x27f   : > { %1678 = vst.msk [vmem:[#allocation2 + $0xf0] sm:$0xff] %vm1647_vm8, %v1612_v13 }
 0x281   : > { %v1807_v18 = vpop.permute.xlu1 %1806 }
 0x282   : > { %v1805_v15 = vpop.permute.xlu0 %1804  ;;  %v2947_v19 = vpop.f32.mrb[16].mxu0  ;;  %1872 = vst.msk [vmem:[#allocation2 + $0xf8] sm:$0xff] %vm1840_vm9, %v1807_v18 }
 0x283   : > { %1871 = vst.msk [vmem:[#allocation2 + $0xf0] sm:$0xff] %vm1840_vm9, %v1805_v15  ;;  %v2157_v39 = vpop.f32.mrb[17].mxu0  ;;  %v2291_v26 = vmul.f32 %v2947_v19, %v2947_v19 }
 0x284   : > { %v2251_v22 = vadd.f32 %v2250_v6, %v2157_v39  ;;  %v2290_v23 = vmul.f32 %v2157_v39, %v2157_v39  ;;  %v2977_v25 = vpack.c.bf16 %v2947_v19, %v2157_v39 }
 0x286   : > { %v2321_v29 = vadd.f32 %v2320_v10, %v2290_v23  ;;  %2978 = vmatprep.subr.bf16.mxu1 %v2977_v25  ;;  %v2252_v27 = vadd.f32 %v2947_v19, %v2251_v22 }
 0x287   : > { %2980 = vmatpush3.bf16.xpose.msra.mxu1 %v2979_v9 }
 0x288   : > { %v2322_v30 = vadd.f32 %v2321_v29, %v2291_v26 }
 0x289   : > { %v1904_v49 = vld [vmem:[#allocation2 + $0xf8] sm:$0xff] }
 0x28a   : > { %v1903_v28 = vld [vmem:[#allocation2 + $0xf0] sm:$0xff] }
 0x28b   : > { %2966 = vmatprep.mubr.msk.f32.mxu0 %vm1910_vm10, %v1903_v28 }
 0x28c   : > { %2967 = vmatmul.mubr.msk.f32.gmra.mrb[30].mxu0 %vm1910_vm10, %v1904_v49 }
 0x2a2   : > { %v2950_v31 = vpop.f32.mrb[18].mxu0 }
 0x2a3   : > { %v2167_v34 = vpop.f32.mrb[19].mxu0  ;;  %v2293_v44 = vmul.f32 %v2950_v31, %v2950_v31 }
 0x2a4   : > { %v2253_v37 = vadd.f32 %v2252_v27, %v2167_v34  ;;  %v2292_v38 = vmul.f32 %v2167_v34, %v2167_v34  ;;  %v2981_v42 = vpack.c.bf16 %v2950_v31, %v2167_v34 }
 0x2a6   : > { %v2323_v46 = vadd.f32 %v2322_v30, %v2292_v38  ;;  %2982 = vmatprep.subr.bf16.mxu1 %v2981_v42  ;;  %v2254_v48 = vadd.f32 %v2950_v31, %v2253_v37 }
 0x2a7   : > { %2984 = vmatpush3.bf16.xpose.msra.mxu1 %v2983_v55  ;;  %v2344_v55 = vlaneseq }
 0x2a8   : > { %v2324_v2 = vadd.f32 %v2323_v46, %v2293_v44 }
 0x2a9   : > { %v2345_v8 = vshrl.u32 %v2344_v55, 7  ;;  %v2347_v10 = vand.u32 127, %v2344_v55 }
 0x2ab   : > { %vm2348_vm11 = vcmp.eq.s32.totalorder %v2345_v8, %v2347_v10 }
 0x2ac   : > { %2909 = vmatprep.mubr.msk.f32.mxu1 %vm2348_vm11, %v3075_v5 }
 0x2c2   : > { %v2953_v3 = vpop.f32.mrb[20].mxu0 }
 0x2c3   : > { %v2177_v9 = vpop.f32.mrb[21].mxu0  ;;  %v2295_v45 = vmul.f32 %v2953_v3, %v2953_v3 }
 0x2c4   : > { %v2255_v50 = vadd.f32 %v2254_v48, %v2177_v9  ;;  %v2294_v35 = vmul.f32 %v2177_v9, %v2177_v9  ;;  %v2985_v33 = vpack.c.bf16 %v2953_v3, %v2177_v9 }
 0x2c6   : > { %v2325_v58 = vadd.f32 %v2324_v2, %v2294_v35  ;;  %2986 = vmatprep.subr.bf16.mxu1 %v2985_v33  ;;  %v2256_v53 = vadd.f32 %v2953_v3, %v2255_v50 }
 0x2c7   : > { %2988 = vmatpush3.bf16.xpose.msra.mxu1 %v2987_v11 }
 0x2c8   : > { %v2326_v56 = vadd.f32 %v2325_v58, %v2295_v45 }
 0x2e2   : > { %v2956_v60 = vpop.f32.mrb[22].mxu0 }
 0x2e3   : > { %v2187_v61 = vpop.f32.mrb[23].mxu0  ;;  %v2297_v0 = vmul.f32 %v2956_v60, %v2956_v60 }
 0x2e4   : > { %v2257_v63 = vadd.f32 %v2256_v53, %v2187_v61  ;;  %v2296_v32 = vmul.f32 %v2187_v61, %v2187_v61  ;;  %v2989_v36 = vpack.c.bf16 %v2956_v60, %v2187_v61 }
 0x2e6   : > { %v2327_v1 = vadd.f32 %v2326_v56, %v2296_v32  ;;  %2990 = vmatprep.subr.bf16.mxu1 %v2989_v36  ;;  %v2258_v6 = vadd.f32 %v2956_v60, %v2257_v63 }
 0x2e7   : > { %2992 = vmatpush3.bf16.xpose.msra.mxu1 %v2991_v47 }
 0x2e8   : > { %v2328_v12 = vadd.f32 %v2327_v1, %v2297_v0 }
 0x302   : > { %v2959_v4 = vpop.f32.mrb[24].mxu0 }
 0x303   : > { %v2197_v11 = vpop.f32.mrb[25].mxu0  ;;  %v2299_v15 = vmul.f32 %v2959_v4, %v2959_v4 }
 0x304   : > { %v2259_v41 = vadd.f32 %v2258_v6, %v2197_v11  ;;  %v2298_v13 = vmul.f32 %v2197_v11, %v2197_v11  ;;  %v2993_v14 = vpack.c.bf16 %v2959_v4, %v2197_v11 }
 0x306   : > { %v2329_v19 = vadd.f32 %v2328_v12, %v2298_v13  ;;  %2994 = vmatprep.subr.bf16.mxu1 %v2993_v14  ;;  %v2260_v18 = vadd.f32 %v2959_v4, %v2259_v41 }
 0x307   : > { %2996 = vmatpush3.bf16.xpose.msra.mxu1 %v2995_v21 }
 0x308   : > { %v2330_v40 = vadd.f32 %v2329_v19, %v2299_v15 }
 0x322   : > { %v2962_v43 = vpop.f32.mrb[26].mxu0 }
 0x323   : > { %v2207_v47 = vpop.f32.mrb[27].mxu0  ;;  %v2301_v25 = vmul.f32 %v2962_v43, %v2962_v43 }
 0x324   : > { %v2261_v39 = vadd.f32 %v2260_v18, %v2207_v47  ;;  %v2300_v22 = vmul.f32 %v2207_v47, %v2207_v47  ;;  %v2997_v23 = vpack.c.bf16 %v2962_v43, %v2207_v47 }
 0x326   : > { %v2331_v26 = vadd.f32 %v2330_v40, %v2300_v22  ;;  %2998 = vmatprep.subr.bf16.mxu1 %v2997_v23  ;;  %v2262_v29 = vadd.f32 %v2962_v43, %v2261_v39 }
 0x327   : > { %3000 = vmatpush3.bf16.xpose.msra.mxu1 %v2999_v52 }
 0x328   : > { %v2332_v27 = vadd.f32 %v2331_v26, %v2301_v25 }
 0x342   : > { %v2965_v30 = vpop.f32.mrb[28].mxu0 }
 0x343   : > { %v2217_v28 = vpop.f32.mrb[29].mxu0  ;;  %v2303_v21 = vmul.f32 %v2965_v30, %v2965_v30 }
 0x344   : > { %v2263_v49 = vadd.f32 %v2262_v29, %v2217_v28  ;;  %v2302_v16 = vmul.f32 %v2217_v28, %v2217_v28  ;;  %v3001_v17 = vpack.c.bf16 %v2965_v30, %v2217_v28 }
 0x346   : > { %v2333_v31 = vadd.f32 %v2332_v27, %v2302_v16  ;;  %3002 = vmatprep.subr.bf16.mxu1 %v3001_v17  ;;  %v2264_v34 = vadd.f32 %v2965_v30, %v2263_v49 }
 0x347   : > { %3004 = vmatpush3.bf16.xpose.msra.mxu1 %v3003_v24 }
 0x348   : > { %v2334_v37 = vadd.f32 %v2333_v31, %v2303_v21 }
 0x35f   : > { %v2968_v38 = vpop.f32.mrb[30].mxu0 }
 0x360   : > { %v2227_v42 = vpop.f32.mrb[31].mxu0  ;;  %v2305_v44 = vmul.f32 %v2968_v38, %v2968_v38 }
 0x361   : > { %v2265_v51 = vadd.f32 %v2264_v34, %v2227_v42  ;;  %v2304_v57 = vmul.f32 %v2227_v42, %v2227_v42  ;;  %v3005_v52 = vpack.c.bf16 %v2968_v38, %v2227_v42 }
 0x363   : > { %v2266_v46 = vadd.f32 %v2968_v38, %v2265_v51  ;;  %v2335_v48 = vadd.f32 %v2334_v37, %v2304_v57  ;;  %3006 = vmatprep.subr.bf16.mxu1 %v3005_v52 }
 0x364   : > { %3008 = vmatpush3.bf16.xpose.msra.mxu1 %v3007_v62 }
 0x365   : > { %v2267_v2 = vrot.slane %v2266_v46, 4  ;;  %v2336_v3 = vadd.f32 %v2335_v48, %v2305_v44 }
 0x367   : > { %v2268_v9 = vadd.f32 %v2267_v2, %v2266_v46  ;;  %v2337_v20 = vrot.slane %v2336_v3, 4 }
 0x369   : > { %v2269_v7 = vrot.slane %v2268_v9, 2  ;;  %v2338_v24 = vadd.f32 %v2337_v20, %v2336_v3 }
 0x36b   : > { %v2270_v50 = vadd.f32 %v2269_v7, %v2268_v9  ;;  %v2339_v35 = vrot.slane %v2338_v24, 2  ;;  %2910 = vmatmul.mubr.msk.f32.vlgmr.msra.gmra.mrb[0].mxu1 %vm2348_vm11, %v3075_v5 }
 0x36d   : > { %v2271_v33 = vrot.slane %v2270_v50, 1  ;;  %v2340_v45 = vadd.f32 %v2339_v35, %v2338_v24 }
 0x36f   : > { %v2272_v54 = vadd.f32 %v2271_v33, %v2270_v50  ;;  %v2341_v59 = vrot.slane %v2340_v45, 1 }
 0x371   : > { %2273 = vst [vmem:[%s254_s18] sm:$0x1] %v2272_v54  ;;  %v2342_v62 = vadd.f32 %v2341_v59, %v2340_v45 }
 0x373   : > { %2343 = vst [vmem:[%s254_s18 + $0x1] sm:$0x1] %v2342_v62 }
 0x43e   : > { %v2417_v58 = vpop.f32.mrb[0].mxu1 }
 0x43f   : > { %2422 = vst [vmem:[%s243_s22] sm:$0xff] %v2417_v58  ;;  %v2419_v53 = vpop.f32.mrb[1].mxu1 }
 0x440   : > { %2423 = vst [vmem:[%s243_s22 + $0x8] sm:$0xff] %v2419_v53 }
 0x441 PF: > { %s14_s14 = sadd.s32 1, %s3065_s14   ;;  %s4220_s12 = smov %s3061_s13 }
 0x442   : > { %p11_p5 = scmp.ge.s32.totalorder %s14_s14, 4   ;;  %s4221_s13 = smov %s4223_s15 }
 0x444   :  { %13 = sbr.rel (!%p11_p5) target bundleno = 2 (0x2), region = 76 }

</bundles_post_ra>
